<compile_context>
chip_gen: v6e
topology: v6e:2x2x1
jax: 0.10.0
libtpu: 0.0.40
codegen_flags: <defaults>
</compile_context>

<pallas_src>
import functools

import jax
import jax.numpy as jnp
import numpy as np
from jax.experimental import pallas as pl
from jax.experimental.pallas import tpu as pltpu

LN_EPS = 1e-8


# ----------------------------------- in-kernel helpers -----------------------------------
def _ln_masked(x, g, b, inv_h, lane_mask):
    """LayerNorm over a zero-padded last dim.  inv_h = 1/true_hidden; lane_mask zeroes the
    padded lanes so mean/var only see the real features.  g/b are zero-padded, so padded
    output lanes are exactly 0 (keeps padding inert through every block)."""
    mu = jnp.sum(x, axis=-1, keepdims=True) * inv_h
    d = (x - mu) * lane_mask
    var = jnp.sum(d * d, axis=-1, keepdims=True) * inv_h
    return d * jax.lax.rsqrt(var + LN_EPS) * g + b


# --------------------------------- fused SASRec kernel ---------------------------------
def sasrec_fused_kernel(x_ref, keep_ref, pos_ref,
                        g1_ref, be1_ref,
                        wq_ref, bq_ref, wkv_ref, bkv_ref, wo_ref, bo_ref,
                        g2_ref, be2_ref,
                        w1_ref, b1_ref, w2_ref, b2_ref,
                        gl_ref, bl_ref,
                        o_ref, attn_scr,
                        *, num_heads, h_valid, emb_scale):
    TB, L, Hp = x_ref.shape
    M = TB * L
    hd = h_valid // num_heads
    inv_h = 1.0 / float(h_valid)
    cd = wq_ref.dtype                    # MXU operand dtype (bf16 by default, f32 accumulation)
    approx_recip = cd != jnp.float32     # EUP vrcp on the fast path; exact divide for f32 check

    j = pl.program_id(1)                 # transformer-block index ("arbitrary" axis)
    last = pl.num_programs(1) - 1
    keep = keep_ref[...]                 # (TB, L, 1): 1.0 valid position, 0.0 padded

    # ---- block 0 only: fused embedding scale + positional add + timeline mask ----
    @pl.when(j == 0)
    def _():
        o_ref[...] = (x_ref[...] * emb_scale + pos_ref[...][None, :, :]) * keep

    x = o_ref[...]                       # activation carried in VMEM across the block axis
    x2 = x.reshape(M, Hp)

    lane = jax.lax.broadcasted_iota(jnp.int32, (1, Hp), 1)
    lane_mask = (lane < h_valid).astype(jnp.float32)

    # attention_layernorm output == Q input == residual source
    q_in = _ln_masked(x2, g1_ref[0], be1_ref[0], inv_h, lane_mask)
    qi = q_in.astype(cd)
    xi = x2.astype(cd)

    # fused projections: Wq pre-scaled by 1/sqrt(hd); Wkv = [K | V] along the output dim
    q = jnp.dot(qi, wq_ref[0], preferred_element_type=jnp.float32) + bq_ref[0]
    kv = jnp.dot(xi, wkv_ref[0], preferred_element_type=jnp.float32) + bkv_ref[0]

    # causal mask, built once per invocation, shared by all heads
    row = jax.lax.broadcasted_iota(jnp.int32, (L, L), 0)
    col = jax.lax.broadcasted_iota(jnp.int32, (L, L), 1)
    allowed = (col <= row)[None, :, :]

    # padded lanes of the head-concat scratch must stay 0 (scratch persists across steps)
    if Hp > h_valid:
        attn_scr[:, h_valid:] = jnp.zeros((M, Hp - h_valid), jnp.float32)

    # Static unroll over heads (num_heads is small and the lane slices must be static).
    # TODO(synk): if the Mosaic dump shows an XLU transpose of k_h feeding the score einsum,
    # emit K pre-transposed as (TB, hd, L); likewise consider a fori_loop(unroll=True) head
    # loop once TB*L grows large enough for vreg pressure to matter.
    for h in range(num_heads):
        sl = slice(h * hd, (h + 1) * hd)
        q_h = q[:, sl].reshape(TB, L, hd)
        k_h = kv[:, h * hd:(h + 1) * hd].reshape(TB, L, hd)
        v_h = kv[:, Hp + h * hd:Hp + (h + 1) * hd].reshape(TB, L, hd)
        s = jnp.einsum("bqd,bkd->bqk", q_h.astype(cd), k_h.astype(cd),
                       preferred_element_type=jnp.float32)          # (TB, L, L)
        s = jnp.where(allowed, s, -1e30)
        s = s - jnp.max(s, axis=-1, keepdims=True)
        p = jnp.exp(s)
        p = p * pl.reciprocal(jnp.sum(p, axis=-1, keepdims=True), approx=approx_recip)
        o_h = jnp.einsum("bqk,bkd->bqd", p.astype(cd), v_h.astype(cd),
                         preferred_element_type=jnp.float32)         # (TB, L, hd)
        attn_scr[:, sl] = o_h.reshape(M, hd)

    # ONE K=Hp output projection over the concatenated heads (no per-head accumulation)
    mha = jnp.dot(attn_scr[...].astype(cd), wo_ref[0],
                  preferred_element_type=jnp.float32) + bo_ref[0]
    seqs = q_in + mha                    # residual from the normed Q (reference semantics)

    # forward_layernorm + PointWiseFeedForward (1x1 convs == per-position linears)
    h2 = _ln_masked(seqs, g2_ref[0], be2_ref[0], inv_h, lane_mask)
    ff = jnp.maximum(jnp.dot(h2.astype(cd), w1_ref[0],
                             preferred_element_type=jnp.float32) + b1_ref[0], 0.0)
    ff = jnp.dot(ff.astype(cd), w2_ref[0],
                 preferred_element_type=jnp.float32) + b2_ref[0]
    out = (ff + h2).reshape(TB, L, Hp) * keep         # seqs *= ~timeline_mask

    # last block: fused last_layernorm; otherwise carry the activation to the next block
    @pl.when(j == last)
    def _():
        o_ref[...] = _ln_masked(out.reshape(M, Hp), gl_ref[...], bl_ref[...],
                                inv_h, lane_mask).reshape(TB, L, Hp)

    @pl.when(j != last)
    def _():
        o_ref[...] = out


# ------------------------------------- wrapper helpers -------------------------------------
def _round_up(x, m):
    return ((x + m - 1) // m) * m


def _vmem_capacity_bytes():
    """Generation-aware physical VMEM (v5e/v6e: 128 MiB, v7x: 64 MiB)."""
    try:
        cap = getattr(pltpu.get_tpu_info(), "vmem_capacity_bytes", None)
        if cap:
            return int(cap)
    except Exception:
        pass
    return 64 * 1024 * 1024          # conservative default (v7x)


def _est_vmem_bytes(tb, L, Hp, nh, wsz):
    """Conservative per-step estimate: double-buffered act in/out + pos/keep, double-buffered
    per-block weights (next-block prefetch), head-concat scratch, unrolled per-head (tb,L,L)
    softmax temporaries, plus headroom for the remaining (tb*L,Hp) temporaries."""
    act = tb * L * Hp * 4
    weights = 6 * Hp * Hp * wsz + 24 * Hp * 4          # wq + wkv(2x) + wo + w1 + w2 + vecs
    scores = 2 * nh * tb * L * L * 4
    temps = 10 * act
    return 4 * act + 2 * (L * Hp * 4 + tb * L * 4) + 2 * weights + act + temps + scores


def _choose_tb(B, L, Hp, nh, wsz, budget, two_core):
    """Largest power-of-two batch tile whose estimate fits the budget; stop growing once the
    MXU M dimension is well filled (tb*L >= 512).  On dual-TensorCore chips keep >= 2 grid
    steps on the parallel batch axis when the batch allows it."""
    tb, best = 1, 1
    while True:
        if _est_vmem_bytes(tb, L, Hp, nh, wsz) > budget:
            break
        best = tb
        if tb >= B or tb * L >= 512:
            break
        tb *= 2
    if two_core:
        while best > 1 and -(-B // best) < 2:
            best //= 2
    return best


def _prepare_fused_params(params, num_heads, H, Hp, weight_dtype):
    """One-time weight massaging: transpose to [in,out], fuse K/V, fold the 1/sqrt(hd) scale
    into Wq/bq, zero-pad everything to Hp lanes, stack over blocks, cast matmul weights to
    weight_dtype (biases / LN params stay f32)."""
    hd = H // num_heads
    scale = 1.0 / float(np.sqrt(hd))

    def pad2(a, rows, cols):
        a = jnp.asarray(a, jnp.float32)
        return jnp.pad(a, ((0, rows - a.shape[0]), (0, cols - a.shape[1])))

    wq, bq, wkv, bkv, wo, bo = [], [], [], [], [], []
    g1, be1, g2, be2 = [], [], [], []
    w1, b1, w2, b2 = [], [], [], []
    for bp in params["blocks"]:
        wq.append(pad2(jnp.asarray(bp["wq"]).T * scale, Hp, Hp))
        bq.append(pad2(jnp.asarray(bp["bq"]) * scale, 1, Hp))
        wkv.append(jnp.concatenate([pad2(jnp.asarray(bp["wk"]).T, Hp, Hp),
                                    pad2(jnp.asarray(bp["wv"]).T, Hp, Hp)], axis=1))
        bkv.append(jnp.concatenate([pad2(bp["bk"], 1, Hp), pad2(bp["bv"], 1, Hp)], axis=1))
        wo.append(pad2(jnp.asarray(bp["wo"]).T, Hp, Hp))
        bo.append(pad2(bp["bo"], 1, Hp))
        g1.append(pad2(bp["g1"], 1, Hp)); be1.append(pad2(bp["be1"], 1, Hp))
        g2.append(pad2(bp["g2"], 1, Hp)); be2.append(pad2(bp["be2"], 1, Hp))
        w1.append(pad2(jnp.asarray(bp["w1"]).T, Hp, Hp)); b1.append(pad2(bp["c1b"], 1, Hp))
        w2.append(pad2(jnp.asarray(bp["w2"]).T, Hp, Hp)); b2.append(pad2(bp["c2b"], 1, Hp))

    st = lambda xs: jnp.stack(xs, axis=0)
    wc = lambda xs: st(xs).astype(weight_dtype)
    return {"g1": st(g1), "be1": st(be1), "g2": st(g2), "be2": st(be2),
            "wq": wc(wq), "bq": st(bq), "wkv": wc(wkv), "bkv": st(bkv),
            "wo": wc(wo), "bo": st(bo),
            "w1": wc(w1), "b1": st(b1), "w2": wc(w2), "b2": st(b2),
            "gl": pad2(params["last_g"], 1, Hp), "bl": pad2(params["last_b"], 1, Hp)}


def _layernorm_ref(x, g, b):
    mu = jnp.mean(x, axis=-1, keepdims=True)
    d = x - mu
    var = jnp.mean(d * d, axis=-1, keepdims=True)
    return d * jax.lax.rsqrt(var + LN_EPS) * g + b


# --------------------------------------- entry point ---------------------------------------
def sasrec_forward(seq_emb, mask, params, *, num_heads, weight_dtype=jnp.bfloat16):
    """seq_emb: (B, L, H) f32, mask: (B, L) bool (True = padded position)."""
    B, L, H = seq_emb.shape
    assert H % num_heads == 0
    emb_scale = float(np.sqrt(H))
    keep3 = (~mask).astype(jnp.float32)[:, :, None]
    pos = jnp.asarray(params["pos_emb"], jnp.float32)[:L]
    nb = len(params["blocks"])

    if nb == 0:                       # degenerate config: no transformer blocks
        seqs = (seq_emb * emb_scale + pos[None]) * keep3
        return _layernorm_ref(seqs, params["last_g"][0], params["last_b"][0])

    # lanes -> multiple of 128, sequence -> multiple of 8, batch -> multiple of the tile
    Hp = _round_up(H, 128)
    Lp = _round_up(L, 8)
    wsz = jnp.dtype(weight_dtype).itemsize
    cap = _vmem_capacity_bytes()
    vmem_limit = min(int(cap * 0.75), 112 * 1024 * 1024)   # ~48 MiB on v7x, ~96 MiB v5e/v6e
    two_core = cap <= 80 * 1024 * 1024                     # v7x proxy (64 MiB, 2 TCs / chip)
    tb = _choose_tb(B, Lp, Hp, num_heads, wsz, int(vmem_limit * 0.8), two_core)
    Bp = _round_up(B, tb)

    x = jnp.zeros((Bp, Lp, Hp), jnp.float32).at[:B, :L, :H].set(seq_emb)
    keep = jnp.zeros((Bp, Lp, 1), jnp.float32).at[:B, :L].set(keep3)
    posp = jnp.zeros((Lp, Hp), jnp.float32).at[:L, :H].set(pos)
    fp = _prepare_fused_params(params, num_heads, H, Hp, weight_dtype)

    kernel = functools.partial(sasrec_fused_kernel, num_heads=num_heads,
                               h_valid=H, emb_scale=emb_scale)

    act_spec = pl.BlockSpec((tb, Lp, Hp), lambda b, j: (b, 0, 0))
    keep_spec = pl.BlockSpec((tb, Lp, 1), lambda b, j: (b, 0, 0))
    pos_spec = pl.BlockSpec((Lp, Hp), lambda b, j: (0, 0))
    lvec = pl.BlockSpec((1, Hp), lambda b, j: (0, 0))
    wmat = lambda n: pl.BlockSpec((1, Hp, n), lambda b, j: (j, 0, 0))
    wvec = lambda n: pl.BlockSpec((1, 1, n), lambda b, j: (j, 0, 0))

    out = pl.pallas_call(
        kernel,
        out_shape=jax.ShapeDtypeStruct((Bp, Lp, Hp), jnp.float32),
        grid=(Bp // tb, nb),
        in_specs=[act_spec, keep_spec, pos_spec,
                  wvec(Hp), wvec(Hp),                  # g1, be1
                  wmat(Hp), wvec(Hp),                  # wq, bq (scale folded)
                  wmat(2 * Hp), wvec(2 * Hp),          # wkv, bkv (fused K|V)
                  wmat(Hp), wvec(Hp),                  # wo, bo
                  wvec(Hp), wvec(Hp),                  # g2, be2
                  wmat(Hp), wvec(Hp),                  # w1 (conv1), b1
                  wmat(Hp), wvec(Hp),                  # w2 (conv2), b2
                  lvec, lvec],                         # last LN gamma / beta
        out_specs=act_spec,                            # resident across the block axis
        scratch_shapes=[pltpu.VMEM((tb * Lp, Hp), jnp.float32)],   # head-concat scratch
        compiler_params=pltpu.CompilerParams(
            dimension_semantics=("parallel", "arbitrary"),
            vmem_limit_bytes=vmem_limit),
    )(x, keep, posp,
      fp["g1"], fp["be1"],
      fp["wq"], fp["bq"], fp["wkv"], fp["bkv"], fp["wo"], fp["bo"],
      fp["g2"], fp["be2"],
      fp["w1"], fp["b1"], fp["w2"], fp["b2"],
      fp["gl"], fp["bl"])

    return out[:B, :L, :H]


# --------------------------- pure-JAX reference (for checking) ---------------------------
def sasrec_reference(seq_emb, mask, params, *, num_heads):
    B, L, H = seq_emb.shape
    keep3 = (~mask).astype(jnp.float32)[:, :, None]
    seqs = seq_emb * jnp.float32(np.sqrt(H)) + params["pos_emb"][:L][None]
    seqs = seqs * keep3
    allowed = jnp.tril(jnp.ones((L, L), dtype=bool))
    hd = H // num_heads
    for bp in params["blocks"]:
        q_in = _layernorm_ref(seqs, bp["g1"][0], bp["be1"][0])
        q = q_in @ bp["wq"].T + bp["bq"][0]
        k = seqs @ bp["wk"].T + bp["bk"][0]
        v = seqs @ bp["wv"].T + bp["bv"][0]
        q = q.reshape(B, L, num_heads, hd).transpose(0, 2, 1, 3)
        k = k.reshape(B, L, num_heads, hd).transpose(0, 2, 1, 3)
        v = v.reshape(B, L, num_heads, hd).transpose(0, 2, 1, 3)
        s = jnp.einsum("bhqd,bhkd->bhqk", q, k) / np.sqrt(hd)
        s = jnp.where(allowed[None, None], s, -1e30)
        p = jax.nn.softmax(s, axis=-1)
        o = jnp.einsum("bhqk,bhkd->bhqd", p, v).transpose(0, 2, 1, 3).reshape(B, L, H)
        mha = o @ bp["wo"].T + bp["bo"][0]
        seqs = q_in + mha
        h2 = _layernorm_ref(seqs, bp["g2"][0], bp["be2"][0])
        ff = jnp.maximum(h2 @ bp["w1"].T + bp["c1b"][0], 0.0) @ bp["w2"].T + bp["c2b"][0]
        seqs = (ff + h2) * keep3
    return _layernorm_ref(seqs, params["last_g"][0], params["last_b"][0])


def init_params(key, maxlen, hidden, num_blocks):
    keys = jax.random.split(key, 2 + 8 * num_blocks)
    H = hidden
    params = {
        "pos_emb": jax.random.normal(keys[0], (maxlen, H), jnp.float32) * 0.02,
        "last_g": jnp.ones((1, H), jnp.float32),
        "last_b": jnp.zeros((1, H), jnp.float32),
        "blocks": [],
    }
    ki = 1
    for _ in range(num_blocks):
        def nrm(shape):
            nonlocal ki
            ki += 1
            return jax.random.normal(keys[ki], shape, jnp.float32) * 0.05
        params["blocks"].append({
            "g1": jnp.ones((1, H), jnp.float32), "be1": jnp.zeros((1, H), jnp.float32),
            "wq": nrm((H, H)), "wk": nrm((H, H)), "wv": nrm((H, H)),
            "bq": jnp.zeros((1, H), jnp.float32),
            "bk": jnp.zeros((1, H), jnp.float32),
            "bv": jnp.zeros((1, H), jnp.float32),
            "wo": nrm((H, H)), "bo": jnp.zeros((1, H), jnp.float32),
            "g2": jnp.ones((1, H), jnp.float32), "be2": jnp.zeros((1, H), jnp.float32),
            "w1": nrm((H, H)), "c1b": nrm((1, H)),
            "w2": nrm((H, H)), "c2b": nrm((1, H)),
        })
    return params


if __name__ == "__main__":
    B, L, H = 4, 8, 32
    NUM_HEADS, NUM_BLOCKS, MAXLEN = 2, 2, 8

    key = jax.random.PRNGKey(0)
    k_emb, k_par = jax.random.split(key)
    seq_emb = jax.random.normal(k_emb, (B, L, H), jnp.float32)
    # timeline padding mask: True = padded leading slots (left padding, SASRec convention)
    lengths = np.array([6, 5, 8, 3])
    mask = jnp.asarray(np.arange(L)[None, :] < (L - lengths)[:, None])

    params = init_params(k_par, MAXLEN, H, NUM_BLOCKS)
    ref = sasrec_reference(seq_emb, mask, params, num_heads=NUM_HEADS)

    # fast path (default): bf16 MXU operands, f32 accumulation, approx softmax reciprocal
    out_bf16 = jax.block_until_ready(
        sasrec_forward(seq_emb, mask, params, num_heads=NUM_HEADS))
    np.testing.assert_allclose(np.asarray(out_bf16), np.asarray(ref), rtol=1e-1, atol=1e-1)

    # exact path: f32 operands, matches the f32 reference tightly
    out_f32 = jax.block_until_ready(
        sasrec_forward(seq_emb, mask, params, num_heads=NUM_HEADS,
                       weight_dtype=jnp.float32))
    np.testing.assert_allclose(np.asarray(out_f32), np.asarray(ref), rtol=1e-4, atol=1e-4)

    print("KERNEL_OK")
</pallas_src>

<mosaic_0001>
module attributes {stable_mosaic.version = 11 : i64} {
  func.func @sasrec_fused_kernel(%arg0: i32, %arg1: i32, %arg2: memref<2x8x128xf32, #tpu.memory_space<vmem>>, %arg3: memref<2x8x1xf32, #tpu.memory_space<vmem>>, %arg4: memref<8x128xf32, #tpu.memory_space<vmem>>, %arg5: memref<1x1x128xf32, #tpu.memory_space<vmem>>, %arg6: memref<1x1x128xf32, #tpu.memory_space<vmem>>, %arg7: memref<1x128x128xbf16, #tpu.memory_space<vmem>>, %arg8: memref<1x1x128xf32, #tpu.memory_space<vmem>>, %arg9: memref<1x128x256xbf16, #tpu.memory_space<vmem>>, %arg10: memref<1x1x256xf32, #tpu.memory_space<vmem>>, %arg11: memref<1x128x128xbf16, #tpu.memory_space<vmem>>, %arg12: memref<1x1x128xf32, #tpu.memory_space<vmem>>, %arg13: memref<1x1x128xf32, #tpu.memory_space<vmem>>, %arg14: memref<1x1x128xf32, #tpu.memory_space<vmem>>, %arg15: memref<1x128x128xbf16, #tpu.memory_space<vmem>>, %arg16: memref<1x1x128xf32, #tpu.memory_space<vmem>>, %arg17: memref<1x128x128xbf16, #tpu.memory_space<vmem>>, %arg18: memref<1x1x128xf32, #tpu.memory_space<vmem>>, %arg19: memref<1x128xf32, #tpu.memory_space<vmem>>, %arg20: memref<1x128xf32, #tpu.memory_space<vmem>>, %arg21: memref<2x8x128xf32, #tpu.memory_space<vmem>>, %arg22: memref<16x128xf32, #tpu.memory_space<vmem>>) attributes {dimension_semantics = [#tpu.dimension_semantics<parallel>, #tpu.dimension_semantics<arbitrary>], iteration_bounds = array<i64: 2, 2>, scalar_prefetch = 0 : i64, scratch_operands = 1 : i64, tpu.core_type = #tpu.core_type<tc>, window_params = [{transform_indices = @transform_0, window_bounds = array<i64: 2, 8, 128>}, {transform_indices = @transform_1, window_bounds = array<i64: 2, 8, 1>}, {pipeline_mode = #tpu.pipeline_mode<synchronous>, transform_indices = @transform_2, window_bounds = array<i64: 8, 128>}, {transform_indices = @transform_3, window_bounds = array<i64: 1, 1, 128>}, {transform_indices = @transform_4, window_bounds = array<i64: 1, 1, 128>}, {transform_indices = @transform_5, window_bounds = array<i64: 1, 128, 128>}, {transform_indices = @transform_6, window_bounds = array<i64: 1, 1, 128>}, {transform_indices = @transform_7, window_bounds = array<i64: 1, 128, 256>}, {transform_indices = @transform_8, window_bounds = array<i64: 1, 1, 256>}, {transform_indices = @transform_9, window_bounds = array<i64: 1, 128, 128>}, {transform_indices = @transform_10, window_bounds = array<i64: 1, 1, 128>}, {transform_indices = @transform_11, window_bounds = array<i64: 1, 1, 128>}, {transform_indices = @transform_12, window_bounds = array<i64: 1, 1, 128>}, {transform_indices = @transform_13, window_bounds = array<i64: 1, 128, 128>}, {transform_indices = @transform_14, window_bounds = array<i64: 1, 1, 128>}, {transform_indices = @transform_15, window_bounds = array<i64: 1, 128, 128>}, {transform_indices = @transform_16, window_bounds = array<i64: 1, 1, 128>}, {pipeline_mode = #tpu.pipeline_mode<synchronous>, transform_indices = @transform_17, window_bounds = array<i64: 1, 128>}, {pipeline_mode = #tpu.pipeline_mode<synchronous>, transform_indices = @transform_18, window_bounds = array<i64: 1, 128>}, {transform_indices = @transform_19, window_bounds = array<i64: 2, 8, 128>}]} {
    %c0 = arith.constant 0 : index
    %c0_0 = arith.constant 0 : index
    %c0_1 = arith.constant 0 : index
    %0 = vector.load %arg3[%c0, %c0_0, %c0_1] : memref<2x8x1xf32, #tpu.memory_space<vmem>>, vector<2x8x1xf32>
    %c0_i32 = arith.constant 0 : i32
    %1 = arith.cmpi eq, %arg1, %c0_i32 : i32
    %2 = arith.extui %1 : i1 to i32
    %c0_i32_2 = arith.constant 0 : i32
    %3 = arith.cmpi ne, %2, %c0_i32_2 : i32
    scf.if %3 {
      %c0_83 = arith.constant 0 : index
      %c0_84 = arith.constant 0 : index
      %c0_85 = arith.constant 0 : index
      %179 = vector.load %arg2[%c0_83, %c0_84, %c0_85] : memref<2x8x128xf32, #tpu.memory_space<vmem>>, vector<2x8x128xf32>
      %cst_86 = arith.constant 5.65685415 : f32
      %180 = vector.broadcast %cst_86 : f32 to vector<2x8x128xf32>
      %181 = arith.mulf %179, %180 : vector<2x8x128xf32>
      %c0_87 = arith.constant 0 : index
      %c0_88 = arith.constant 0 : index
      %182 = vector.load %arg4[%c0_87, %c0_88] : memref<8x128xf32, #tpu.memory_space<vmem>>, vector<8x128xf32>
      %183 = vector.shape_cast %182 : vector<8x128xf32> to vector<1x8x128xf32>
      %184 = vector.broadcast %183 : vector<1x8x128xf32> to vector<2x8x128xf32>
      %185 = arith.addf %181, %184 : vector<2x8x128xf32>
      %186 = vector.broadcast %0 : vector<2x8x1xf32> to vector<2x8x128xf32>
      %187 = arith.mulf %185, %186 : vector<2x8x128xf32>
      %c0_89 = arith.constant 0 : index
      %c0_90 = arith.constant 0 : index
      %c0_91 = arith.constant 0 : index
      %188 = vector.load %arg21[%c0_89, %c0_90, %c0_91] : memref<2x8x128xf32, #tpu.memory_space<vmem>>, vector<2x8x128xf32>
      tpu.vector_store %arg21[%c0_89, %c0_90, %c0_91], %187 {strides = array<i32>} : memref<2x8x128xf32, #tpu.memory_space<vmem>>, vector<2x8x128xf32>,
    } else {
    }
    %c0_3 = arith.constant 0 : index
    %c0_4 = arith.constant 0 : index
    %c0_5 = arith.constant 0 : index
    %4 = vector.load %arg21[%c0_3, %c0_4, %c0_5] : memref<2x8x128xf32, #tpu.memory_space<vmem>>, vector<2x8x128xf32>
    %5 = vector.shape_cast %4 : vector<2x8x128xf32> to vector<16x128xf32>
    %6 = tpu.iota {dimensions = array<i32: 1>} : vector<1x128xi32>
    %c32_i32 = arith.constant 32 : i32
    %7 = vector.broadcast %c32_i32 : i32 to vector<1x128xi32>
    %8 = arith.cmpi slt, %6, %7 : vector<1x128xi32>
    %9 = arith.extui %8 : vector<1x128xi1> to vector<1x128xi32>
    %10 = arith.sitofp %9 : vector<1x128xi32> to vector<1x128xf32>
    %c0_6 = arith.constant 0 : index
    %c0_7 = arith.constant 0 : index
    %c0_8 = arith.constant 0 : index
    %11 = vector.load %arg5[%c0_6, %c0_7, %c0_8] : memref<1x1x128xf32, #tpu.memory_space<vmem>>, vector<1x1x128xf32>
    %12 = vector.shape_cast %11 : vector<1x1x128xf32> to vector<1x128xf32>
    %c0_9 = arith.constant 0 : index
    %c0_10 = arith.constant 0 : index
    %c0_11 = arith.constant 0 : index
    %13 = vector.load %arg6[%c0_9, %c0_10, %c0_11] : memref<1x1x128xf32, #tpu.memory_space<vmem>>, vector<1x1x128xf32>
    %14 = vector.shape_cast %13 : vector<1x1x128xf32> to vector<1x128xf32>
    %cst = arith.constant dense<0.000000e+00> : vector<16xf32>
    %15 = vector.multi_reduction <add>, %5, %cst [1] : vector<16x128xf32> to vector<16xf32>
    %16 = vector.shape_cast %15 : vector<16xf32> to vector<16x1xf32>
    %cst_12 = arith.constant 3.125000e-02 : f32
    %17 = vector.broadcast %cst_12 : f32 to vector<16x1xf32>
    %18 = arith.mulf %16, %17 : vector<16x1xf32>
    %19 = vector.broadcast %18 : vector<16x1xf32> to vector<16x128xf32>
    %20 = arith.subf %5, %19 : vector<16x128xf32>
    %21 = vector.broadcast %10 : vector<1x128xf32> to vector<16x128xf32>
    %22 = arith.mulf %20, %21 : vector<16x128xf32>
    %23 = arith.mulf %22, %22 : vector<16x128xf32>
    %cst_13 = arith.constant dense<0.000000e+00> : vector<16xf32>
    %24 = vector.multi_reduction <add>, %23, %cst_13 [1] : vector<16x128xf32> to vector<16xf32>
    %25 = vector.shape_cast %24 : vector<16xf32> to vector<16x1xf32>
    %cst_14 = arith.constant 3.125000e-02 : f32
    %26 = vector.broadcast %cst_14 : f32 to vector<16x1xf32>
    %27 = arith.mulf %25, %26 : vector<16x1xf32>
    %cst_15 = arith.constant 9.99999993E-9 : f32
    %28 = vector.broadcast %cst_15 : f32 to vector<16x1xf32>
    %29 = arith.addf %27, %28 : vector<16x1xf32>
    %30 = math.rsqrt %29 : vector<16x1xf32>
    %31 = vector.broadcast %30 : vector<16x1xf32> to vector<16x128xf32>
    %32 = arith.mulf %22, %31 : vector<16x128xf32>
    %33 = vector.broadcast %12 : vector<1x128xf32> to vector<16x128xf32>
    %34 = arith.mulf %32, %33 : vector<16x128xf32>
    %35 = vector.broadcast %14 : vector<1x128xf32> to vector<16x128xf32>
    %36 = arith.addf %34, %35 : vector<16x128xf32>
    %37 = arith.truncf %36 : vector<16x128xf32> to vector<16x128xbf16>
    %38 = arith.truncf %5 : vector<16x128xf32> to vector<16x128xbf16>
    %c0_16 = arith.constant 0 : index
    %c0_17 = arith.constant 0 : index
    %c0_18 = arith.constant 0 : index
    %39 = vector.load %arg7[%c0_16, %c0_17, %c0_18] : memref<1x128x128xbf16, #tpu.memory_space<vmem>>, vector<1x128x128xbf16>
    %40 = vector.shape_cast %39 : vector<1x128x128xbf16> to vector<128x128xbf16>
    %cst_19 = arith.constant dense<0.000000e+00> : vector<16x128xf32>
    %41 = tpu.matmul %37, %40, %cst_19 {dimension_numbers = #tpu.dot_dimension_numbers<[1], [0], [0], [1], [0, 0, 1, 1], [], []>} : vector<16x128xbf16>, vector<128x128xbf16>, vector<16x128xf32> -> vector<16x128xf32>
    %c0_20 = arith.constant 0 : index
    %c0_21 = arith.constant 0 : index
    %c0_22 = arith.constant 0 : index
    %42 = vector.load %arg8[%c0_20, %c0_21, %c0_22] : memref<1x1x128xf32, #tpu.memory_space<vmem>>, vector<1x1x128xf32>
    %43 = vector.shape_cast %42 : vector<1x1x128xf32> to vector<1x128xf32>
    %44 = vector.broadcast %43 : vector<1x128xf32> to vector<16x128xf32>
    %45 = arith.addf %41, %44 : vector<16x128xf32>
    %c0_23 = arith.constant 0 : index
    %c0_24 = arith.constant 0 : index
    %c0_25 = arith.constant 0 : index
    %46 = vector.load %arg9[%c0_23, %c0_24, %c0_25] : memref<1x128x256xbf16, #tpu.memory_space<vmem>>, vector<1x128x256xbf16>
    %47 = vector.shape_cast %46 : vector<1x128x256xbf16> to vector<128x256xbf16>
    %cst_26 = arith.constant dense<0.000000e+00> : vector<16x256xf32>
    %48 = tpu.matmul %38, %47, %cst_26 {dimension_numbers = #tpu.dot_dimension_numbers<[1], [0], [0], [1], [0, 0, 1, 1], [], []>} : vector<16x128xbf16>, vector<128x256xbf16>, vector<16x256xf32> -> vector<16x256xf32>
    %c0_27 = arith.constant 0 : index
    %c0_28 = arith.constant 0 : index
    %c0_29 = arith.constant 0 : index
    %49 = vector.load %arg10[%c0_27, %c0_28, %c0_29] : memref<1x1x256xf32, #tpu.memory_space<vmem>>, vector<1x1x256xf32>
    %50 = vector.shape_cast %49 : vector<1x1x256xf32> to vector<1x256xf32>
    %51 = vector.broadcast %50 : vector<1x256xf32> to vector<16x256xf32>
    %52 = arith.addf %48, %51 : vector<16x256xf32>
    %53 = tpu.iota {dimensions = array<i32: 0>} : vector<8x8xi32>
    %54 = tpu.iota {dimensions = array<i32: 1>} : vector<8x8xi32>
    %55 = arith.cmpi sle, %54, %53 : vector<8x8xi32>
    %56 = vector.shape_cast %55 : vector<8x8xi1> to vector<1x8x8xi1>
    %cst_30 = arith.constant 0.000000e+00 : f32
    %57 = vector.broadcast %cst_30 : f32 to vector<16x96xf32>
    %c0_31 = arith.constant 0 : index
    %c32 = arith.constant 32 : index
    %58 = vector.load %arg22[%c0_31, %c32] : memref<16x128xf32, #tpu.memory_space<vmem>>, vector<16x96xf32>
    tpu.vector_store %arg22[%c0_31, %c32], %57 {strides = array<i32>} : memref<16x128xf32, #tpu.memory_space<vmem>>, vector<16x96xf32>,
    %59 = vector.extract_strided_slice %45 {offsets = [0, 0], sizes = [16, 16], strides = [1, 1]} : vector<16x128xf32> to vector<16x16xf32>
    %60 = vector.shape_cast %59 : vector<16x16xf32> to vector<2x8x16xf32>
    %61 = vector.extract_strided_slice %52 {offsets = [0, 0], sizes = [16, 16], strides = [1, 1]} : vector<16x256xf32> to vector<16x16xf32>
    %62 = vector.shape_cast %61 : vector<16x16xf32> to vector<2x8x16xf32>
    %63 = vector.extract_strided_slice %52 {offsets = [0, 128], sizes = [16, 16], strides = [1, 1]} : vector<16x256xf32> to vector<16x16xf32>
    %64 = vector.shape_cast %63 : vector<16x16xf32> to vector<2x8x16xf32>
    %65 = arith.truncf %60 : vector<2x8x16xf32> to vector<2x8x16xbf16>
    %66 = arith.truncf %62 : vector<2x8x16xf32> to vector<2x8x16xbf16>
    "tpu.trace_start"() <{level = 10 : i32, message = "bqd,bkd->bqk"}> : () -> ()
    %cst_32 = arith.constant dense<0.000000e+00> : vector<2x8x8xf32>
    %67 = tpu.matmul %65, %66, %cst_32 {dimension_numbers = #tpu.dot_dimension_numbers<[2], [2], [1], [1], [0, 0, 0, 1, 1, 1], [0], [0]>} : vector<2x8x16xbf16>, vector<2x8x16xbf16>, vector<2x8x8xf32> -> vector<2x8x8xf32>
    %cst_33 = arith.constant -1.000000e+30 : f32
    "tpu.trace_stop"() : () -> ()
    %68 = vector.shape_cast %56 : vector<1x8x8xi1> to vector<1x8x8xi1>
    %69 = vector.broadcast %68 : vector<1x8x8xi1> to vector<2x8x8xi1>
    %70 = vector.broadcast %cst_33 : f32 to vector<2x8x8xf32>
    %71 = arith.select %69, %67, %70 : vector<2x8x8xi1>, vector<2x8x8xf32>
    %cst_34 = arith.constant dense<0xFF800000> : vector<2x8xf32>
    %72 = vector.multi_reduction <maximumf>, %71, %cst_34 [2] : vector<2x8x8xf32> to vector<2x8xf32>
    %73 = vector.shape_cast %72 : vector<2x8xf32> to vector<2x8x1xf32>
    %74 = vector.broadcast %73 : vector<2x8x1xf32> to vector<2x8x8xf32>
    %75 = arith.subf %71, %74 : vector<2x8x8xf32>
    %76 = math.exp %75 : vector<2x8x8xf32>
    %cst_35 = arith.constant dense<0.000000e+00> : vector<2x8xf32>
    %77 = vector.multi_reduction <add>, %76, %cst_35 [2] : vector<2x8x8xf32> to vector<2x8xf32>
    %78 = vector.shape_cast %77 : vector<2x8xf32> to vector<2x8x1xf32>
    %79 = tpu.reciprocal %78 {approx = true} : vector<2x8x1xf32> -> vector<2x8x1xf32>
    %80 = vector.broadcast %79 : vector<2x8x1xf32> to vector<2x8x8xf32>
    %81 = arith.mulf %76, %80 : vector<2x8x8xf32>
    %82 = arith.truncf %81 : vector<2x8x8xf32> to vector<2x8x8xbf16>
    %83 = arith.truncf %64 : vector<2x8x16xf32> to vector<2x8x16xbf16>
    "tpu.trace_start"() <{level = 10 : i32, message = "bqk,bkd->bqd"}> : () -> ()
    %cst_36 = arith.constant dense<0.000000e+00> : vector<2x8x16xf32>
    %84 = tpu.matmul %82, %83, %cst_36 {dimension_numbers = #tpu.dot_dimension_numbers<[2], [1], [1], [2], [0, 0, 0, 1, 1, 2], [0], [0]>} : vector<2x8x8xbf16>, vector<2x8x16xbf16>, vector<2x8x16xf32> -> vector<2x8x16xf32>
    "tpu.trace_stop"() : () -> ()
    %85 = vector.shape_cast %84 : vector<2x8x16xf32> to vector<16x16xf32>
    %c0_37 = arith.constant 0 : index
    %c0_38 = arith.constant 0 : index
    %86 = vector.load %arg22[%c0_37, %c0_38] : memref<16x128xf32, #tpu.memory_space<vmem>>, vector<16x16xf32>
    tpu.vector_store %arg22[%c0_37, %c0_38], %85 {strides = array<i32>} : memref<16x128xf32, #tpu.memory_space<vmem>>, vector<16x16xf32>,
    %87 = vector.extract_strided_slice %45 {offsets = [0, 16], sizes = [16, 16], strides = [1, 1]} : vector<16x128xf32> to vector<16x16xf32>
    %88 = vector.shape_cast %87 : vector<16x16xf32> to vector<2x8x16xf32>
    %89 = vector.extract_strided_slice %52 {offsets = [0, 16], sizes = [16, 16], strides = [1, 1]} : vector<16x256xf32> to vector<16x16xf32>
    %90 = vector.shape_cast %89 : vector<16x16xf32> to vector<2x8x16xf32>
    %91 = vector.extract_strided_slice %52 {offsets = [0, 144], sizes = [16, 16], strides = [1, 1]} : vector<16x256xf32> to vector<16x16xf32>
    %92 = vector.shape_cast %91 : vector<16x16xf32> to vector<2x8x16xf32>
    %93 = arith.truncf %88 : vector<2x8x16xf32> to vector<2x8x16xbf16>
    %94 = arith.truncf %90 : vector<2x8x16xf32> to vector<2x8x16xbf16>
    "tpu.trace_start"() <{level = 10 : i32, message = "bqd,bkd->bqk"}> : () -> ()
    %cst_39 = arith.constant dense<0.000000e+00> : vector<2x8x8xf32>
    %95 = tpu.matmul %93, %94, %cst_39 {dimension_numbers = #tpu.dot_dimension_numbers<[2], [2], [1], [1], [0, 0, 0, 1, 1, 1], [0], [0]>} : vector<2x8x16xbf16>, vector<2x8x16xbf16>, vector<2x8x8xf32> -> vector<2x8x8xf32>
    %cst_40 = arith.constant -1.000000e+30 : f32
    "tpu.trace_stop"() : () -> ()
    %96 = vector.shape_cast %56 : vector<1x8x8xi1> to vector<1x8x8xi1>
    %97 = vector.broadcast %96 : vector<1x8x8xi1> to vector<2x8x8xi1>
    %98 = vector.broadcast %cst_40 : f32 to vector<2x8x8xf32>
    %99 = arith.select %97, %95, %98 : vector<2x8x8xi1>, vector<2x8x8xf32>
    %cst_41 = arith.constant dense<0xFF800000> : vector<2x8xf32>
    %100 = vector.multi_reduction <maximumf>, %99, %cst_41 [2] : vector<2x8x8xf32> to vector<2x8xf32>
    %101 = vector.shape_cast %100 : vector<2x8xf32> to vector<2x8x1xf32>
    %102 = vector.broadcast %101 : vector<2x8x1xf32> to vector<2x8x8xf32>
    %103 = arith.subf %99, %102 : vector<2x8x8xf32>
    %104 = math.exp %103 : vector<2x8x8xf32>
    %cst_42 = arith.constant dense<0.000000e+00> : vector<2x8xf32>
    %105 = vector.multi_reduction <add>, %104, %cst_42 [2] : vector<2x8x8xf32> to vector<2x8xf32>
    %106 = vector.shape_cast %105 : vector<2x8xf32> to vector<2x8x1xf32>
    %107 = tpu.reciprocal %106 {approx = true} : vector<2x8x1xf32> -> vector<2x8x1xf32>
    %108 = vector.broadcast %107 : vector<2x8x1xf32> to vector<2x8x8xf32>
    %109 = arith.mulf %104, %108 : vector<2x8x8xf32>
    %110 = arith.truncf %109 : vector<2x8x8xf32> to vector<2x8x8xbf16>
    %111 = arith.truncf %92 : vector<2x8x16xf32> to vector<2x8x16xbf16>
    "tpu.trace_start"() <{level = 10 : i32, message = "bqk,bkd->bqd"}> : () -> ()
    %cst_43 = arith.constant dense<0.000000e+00> : vector<2x8x16xf32>
    %112 = tpu.matmul %110, %111, %cst_43 {dimension_numbers = #tpu.dot_dimension_numbers<[2], [1], [1], [2], [0, 0, 0, 1, 1, 2], [0], [0]>} : vector<2x8x8xbf16>, vector<2x8x16xbf16>, vector<2x8x16xf32> -> vector<2x8x16xf32>
    "tpu.trace_stop"() : () -> ()
    %113 = vector.shape_cast %112 : vector<2x8x16xf32> to vector<16x16xf32>
    %c0_44 = arith.constant 0 : index
    %c16 = arith.constant 16 : index
    %114 = vector.load %arg22[%c0_44, %c16] : memref<16x128xf32, #tpu.memory_space<vmem>>, vector<16x16xf32>
    tpu.vector_store %arg22[%c0_44, %c16], %113 {strides = array<i32>} : memref<16x128xf32, #tpu.memory_space<vmem>>, vector<16x16xf32>,
    %c0_45 = arith.constant 0 : index
    %c0_46 = arith.constant 0 : index
    %115 = vector.load %arg22[%c0_45, %c0_46] : memref<16x128xf32, #tpu.memory_space<vmem>>, vector<16x128xf32>
    %116 = arith.truncf %115 : vector<16x128xf32> to vector<16x128xbf16>
    %c0_47 = arith.constant 0 : index
    %c0_48 = arith.constant 0 : index
    %c0_49 = arith.constant 0 : index
    %117 = vector.load %arg11[%c0_47, %c0_48, %c0_49] : memref<1x128x128xbf16, #tpu.memory_space<vmem>>, vector<1x128x128xbf16>
    %118 = vector.shape_cast %117 : vector<1x128x128xbf16> to vector<128x128xbf16>
    %cst_50 = arith.constant dense<0.000000e+00> : vector<16x128xf32>
    %119 = tpu.matmul %116, %118, %cst_50 {dimension_numbers = #tpu.dot_dimension_numbers<[1], [0], [0], [1], [0, 0, 1, 1], [], []>} : vector<16x128xbf16>, vector<128x128xbf16>, vector<16x128xf32> -> vector<16x128xf32>
    %c0_51 = arith.constant 0 : index
    %c0_52 = arith.constant 0 : index
    %c0_53 = arith.constant 0 : index
    %120 = vector.load %arg12[%c0_51, %c0_52, %c0_53] : memref<1x1x128xf32, #tpu.memory_space<vmem>>, vector<1x1x128xf32>
    %121 = vector.shape_cast %120 : vector<1x1x128xf32> to vector<1x128xf32>
    %122 = vector.broadcast %121 : vector<1x128xf32> to vector<16x128xf32>
    %123 = arith.addf %119, %122 : vector<16x128xf32>
    %124 = arith.addf %36, %123 : vector<16x128xf32>
    %c0_54 = arith.constant 0 : index
    %c0_55 = arith.constant 0 : index
    %c0_56 = arith.constant 0 : index
    %125 = vector.load %arg13[%c0_54, %c0_55, %c0_56] : memref<1x1x128xf32, #tpu.memory_space<vmem>>, vector<1x1x128xf32>
    %126 = vector.shape_cast %125 : vector<1x1x128xf32> to vector<1x128xf32>
    %c0_57 = arith.constant 0 : index
    %c0_58 = arith.constant 0 : index
    %c0_59 = arith.constant 0 : index
    %127 = vector.load %arg14[%c0_57, %c0_58, %c0_59] : memref<1x1x128xf32, #tpu.memory_space<vmem>>, vector<1x1x128xf32>
    %128 = vector.shape_cast %127 : vector<1x1x128xf32> to vector<1x128xf32>
    %cst_60 = arith.constant dense<0.000000e+00> : vector<16xf32>
    %129 = vector.multi_reduction <add>, %124, %cst_60 [1] : vector<16x128xf32> to vector<16xf32>
    %130 = vector.shape_cast %129 : vector<16xf32> to vector<16x1xf32>
    %cst_61 = arith.constant 3.125000e-02 : f32
    %131 = vector.broadcast %cst_61 : f32 to vector<16x1xf32>
    %132 = arith.mulf %130, %131 : vector<16x1xf32>
    %133 = vector.broadcast %132 : vector<16x1xf32> to vector<16x128xf32>
    %134 = arith.subf %124, %133 : vector<16x128xf32>
    %135 = vector.broadcast %10 : vector<1x128xf32> to vector<16x128xf32>
    %136 = arith.mulf %134, %135 : vector<16x128xf32>
    %137 = arith.mulf %136, %136 : vector<16x128xf32>
    %cst_62 = arith.constant dense<0.000000e+00> : vector<16xf32>
    %138 = vector.multi_reduction <add>, %137, %cst_62 [1] : vector<16x128xf32> to vector<16xf32>
    %139 = vector.shape_cast %138 : vector<16xf32> to vector<16x1xf32>
    %cst_63 = arith.constant 3.125000e-02 : f32
    %140 = vector.broadcast %cst_63 : f32 to vector<16x1xf32>
    %141 = arith.mulf %139, %140 : vector<16x1xf32>
    %cst_64 = arith.constant 9.99999993E-9 : f32
    %142 = vector.broadcast %cst_64 : f32 to vector<16x1xf32>
    %143 = arith.addf %141, %142 : vector<16x1xf32>
    %144 = math.rsqrt %143 : vector<16x1xf32>
    %145 = vector.broadcast %144 : vector<16x1xf32> to vector<16x128xf32>
    %146 = arith.mulf %136, %145 : vector<16x128xf32>
    %147 = vector.broadcast %126 : vector<1x128xf32> to vector<16x128xf32>
    %148 = arith.mulf %146, %147 : vector<16x128xf32>
    %149 = vector.broadcast %128 : vector<1x128xf32> to vector<16x128xf32>
    %150 = arith.addf %148, %149 : vector<16x128xf32>
    %151 = arith.truncf %150 : vector<16x128xf32> to vector<16x128xbf16>
    %c0_65 = arith.constant 0 : index
    %c0_66 = arith.constant 0 : index
    %c0_67 = arith.constant 0 : index
    %152 = vector.load %arg15[%c0_65, %c0_66, %c0_67] : memref<1x128x128xbf16, #tpu.memory_space<vmem>>, vector<1x128x128xbf16>
    %153 = vector.shape_cast %152 : vector<1x128x128xbf16> to vector<128x128xbf16>
    %cst_68 = arith.constant dense<0.000000e+00> : vector<16x128xf32>
    %154 = tpu.matmul %151, %153, %cst_68 {dimension_numbers = #tpu.dot_dimension_numbers<[1], [0], [0], [1], [0, 0, 1, 1], [], []>} : vector<16x128xbf16>, vector<128x128xbf16>, vector<16x128xf32> -> vector<16x128xf32>
    %c0_69 = arith.constant 0 : index
    %c0_70 = arith.constant 0 : index
    %c0_71 = arith.constant 0 : index
    %155 = vector.load %arg16[%c0_69, %c0_70, %c0_71] : memref<1x1x128xf32, #tpu.memory_space<vmem>>, vector<1x1x128xf32>
    %156 = vector.shape_cast %155 : vector<1x1x128xf32> to vector<1x128xf32>
    %157 = vector.broadcast %156 : vector<1x128xf32> to vector<16x128xf32>
    %158 = arith.addf %154, %157 : vector<16x128xf32>
    %cst_72 = arith.constant 0.000000e+00 : f32
    %159 = vector.broadcast %cst_72 : f32 to vector<16x128xf32>
    %160 = arith.maximumf %158, %159 : vector<16x128xf32>
    %161 = arith.truncf %160 : vector<16x128xf32> to vector<16x128xbf16>
    %c0_73 = arith.constant 0 : index
    %c0_74 = arith.constant 0 : index
    %c0_75 = arith.constant 0 : index
    %162 = vector.load %arg17[%c0_73, %c0_74, %c0_75] : memref<1x128x128xbf16, #tpu.memory_space<vmem>>, vector<1x128x128xbf16>
    %163 = vector.shape_cast %162 : vector<1x128x128xbf16> to vector<128x128xbf16>
    %cst_76 = arith.constant dense<0.000000e+00> : vector<16x128xf32>
    %164 = tpu.matmul %161, %163, %cst_76 {dimension_numbers = #tpu.dot_dimension_numbers<[1], [0], [0], [1], [0, 0, 1, 1], [], []>} : vector<16x128xbf16>, vector<128x128xbf16>, vector<16x128xf32> -> vector<16x128xf32>
    %c0_77 = arith.constant 0 : index
    %c0_78 = arith.constant 0 : index
    %c0_79 = arith.constant 0 : index
    %165 = vector.load %arg18[%c0_77, %c0_78, %c0_79] : memref<1x1x128xf32, #tpu.memory_space<vmem>>, vector<1x1x128xf32>
    %166 = vector.shape_cast %165 : vector<1x1x128xf32> to vector<1x128xf32>
    %167 = vector.broadcast %166 : vector<1x128xf32> to vector<16x128xf32>
    %168 = arith.addf %164, %167 : vector<16x128xf32>
    %169 = arith.addf %168, %150 : vector<16x128xf32>
    %170 = vector.shape_cast %169 : vector<16x128xf32> to vector<2x8x128xf32>
    %171 = vector.broadcast %0 : vector<2x8x1xf32> to vector<2x8x128xf32>
    %172 = arith.mulf %170, %171 : vector<2x8x128xf32>
    %c1_i32 = arith.constant 1 : i32
    %173 = arith.cmpi eq, %arg1, %c1_i32 : i32
    %174 = arith.extui %173 : i1 to i32
    %c0_i32_80 = arith.constant 0 : i32
    %175 = arith.cmpi ne, %174, %c0_i32_80 : i32
    scf.if %175 {
      %179 = vector.shape_cast %172 : vector<2x8x128xf32> to vector<16x128xf32>
      %c0_83 = arith.constant 0 : index
      %c0_84 = arith.constant 0 : index
      %180 = vector.load %arg19[%c0_83, %c0_84] : memref<1x128xf32, #tpu.memory_space<vmem>>, vector<1x128xf32>
      %c0_85 = arith.constant 0 : index
      %c0_86 = arith.constant 0 : index
      %181 = vector.load %arg20[%c0_85, %c0_86] : memref<1x128xf32, #tpu.memory_space<vmem>>, vector<1x128xf32>
      %cst_87 = arith.constant dense<0.000000e+00> : vector<16xf32>
      %182 = vector.multi_reduction <add>, %179, %cst_87 [1] : vector<16x128xf32> to vector<16xf32>
      %183 = vector.shape_cast %182 : vector<16xf32> to vector<16x1xf32>
      %cst_88 = arith.constant 3.125000e-02 : f32
      %184 = vector.broadcast %cst_88 : f32 to vector<16x1xf32>
      %185 = arith.mulf %183, %184 : vector<16x1xf32>
      %186 = vector.broadcast %185 : vector<16x1xf32> to vector<16x128xf32>
      %187 = arith.subf %179, %186 : vector<16x128xf32>
      %188 = vector.broadcast %10 : vector<1x128xf32> to vector<16x128xf32>
      %189 = arith.mulf %187, %188 : vector<16x128xf32>
      %190 = arith.mulf %189, %189 : vector<16x128xf32>
      %cst_89 = arith.constant dense<0.000000e+00> : vector<16xf32>
      %191 = vector.multi_reduction <add>, %190, %cst_89 [1] : vector<16x128xf32> to vector<16xf32>
      %192 = vector.shape_cast %191 : vector<16xf32> to vector<16x1xf32>
      %cst_90 = arith.constant 3.125000e-02 : f32
      %193 = vector.broadcast %cst_90 : f32 to vector<16x1xf32>
      %194 = arith.mulf %192, %193 : vector<16x1xf32>
      %cst_91 = arith.constant 9.99999993E-9 : f32
      %195 = vector.broadcast %cst_91 : f32 to vector<16x1xf32>
      %196 = arith.addf %194, %195 : vector<16x1xf32>
      %197 = math.rsqrt %196 : vector<16x1xf32>
      %198 = vector.broadcast %197 : vector<16x1xf32> to vector<16x128xf32>
      %199 = arith.mulf %189, %198 : vector<16x128xf32>
      %200 = vector.broadcast %180 : vector<1x128xf32> to vector<16x128xf32>
      %201 = arith.mulf %199, %200 : vector<16x128xf32>
      %202 = vector.broadcast %181 : vector<1x128xf32> to vector<16x128xf32>
      %203 = arith.addf %201, %202 : vector<16x128xf32>
      %204 = vector.shape_cast %203 : vector<16x128xf32> to vector<2x8x128xf32>
      %c0_92 = arith.constant 0 : index
      %c0_93 = arith.constant 0 : index
      %c0_94 = arith.constant 0 : index
      %205 = vector.load %arg21[%c0_92, %c0_93, %c0_94] : memref<2x8x128xf32, #tpu.memory_space<vmem>>, vector<2x8x128xf32>
      tpu.vector_store %arg21[%c0_92, %c0_93, %c0_94], %204 {strides = array<i32>} : memref<2x8x128xf32, #tpu.memory_space<vmem>>, vector<2x8x128xf32>,
    } else {
    }
    %c1_i32_81 = arith.constant 1 : i32
    %176 = arith.cmpi ne, %arg1, %c1_i32_81 : i32
    %177 = arith.extui %176 : i1 to i32
    %c0_i32_82 = arith.constant 0 : i32
    %178 = arith.cmpi ne, %177, %c0_i32_82 : i32
    scf.if %178 {
      %c0_83 = arith.constant 0 : index
      %c0_84 = arith.constant 0 : index
      %c0_85 = arith.constant 0 : index
      %179 = vector.load %arg21[%c0_83, %c0_84, %c0_85] : memref<2x8x128xf32, #tpu.memory_space<vmem>>, vector<2x8x128xf32>
      tpu.vector_store %arg21[%c0_83, %c0_84, %c0_85], %172 {strides = array<i32>} : memref<2x8x128xf32, #tpu.memory_space<vmem>>, vector<2x8x128xf32>,
    } else {
    }
    return
  }
  func.func @transform_0(%arg0: i32, %arg1: i32) -> (i32, i32, i32) {
    %c0_i32 = arith.constant 0 : i32
    %c0_i32_0 = arith.constant 0 : i32
    %c0_i32_1 = arith.constant 0 : i32
    return %arg0, %c0_i32, %c0_i32_0 : i32, i32, i32
  }
  func.func @transform_1(%arg0: i32, %arg1: i32) -> (i32, i32, i32) {
    %c0_i32 = arith.constant 0 : i32
    %c0_i32_0 = arith.constant 0 : i32
    %c0_i32_1 = arith.constant 0 : i32
    return %arg0, %c0_i32, %c0_i32_0 : i32, i32, i32
  }
  func.func @transform_2(%arg0: i32, %arg1: i32) -> (i32, i32) {
    %c0_i32 = arith.constant 0 : i32
    %c0_i32_0 = arith.constant 0 : i32
    %c0_i32_1 = arith.constant 0 : i32
    return %c0_i32, %c0_i32_0 : i32, i32
  }
  func.func @transform_3(%arg0: i32, %arg1: i32) -> (i32, i32, i32) {
    %c0_i32 = arith.constant 0 : i32
    %c0_i32_0 = arith.constant 0 : i32
    %c0_i32_1 = arith.constant 0 : i32
    return %arg1, %c0_i32, %c0_i32_0 : i32, i32, i32
  }
  func.func @transform_4(%arg0: i32, %arg1: i32) -> (i32, i32, i32) {
    %c0_i32 = arith.constant 0 : i32
    %c0_i32_0 = arith.constant 0 : i32
    %c0_i32_1 = arith.constant 0 : i32
    return %arg1, %c0_i32, %c0_i32_0 : i32, i32, i32
  }
  func.func @transform_5(%arg0: i32, %arg1: i32) -> (i32, i32, i32) {
    %c0_i32 = arith.constant 0 : i32
    %c0_i32_0 = arith.constant 0 : i32
    %c0_i32_1 = arith.constant 0 : i32
    return %arg1, %c0_i32, %c0_i32_0 : i32, i32, i32
  }
  func.func @transform_6(%arg0: i32, %arg1: i32) -> (i32, i32, i32) {
    %c0_i32 = arith.constant 0 : i32
    %c0_i32_0 = arith.constant 0 : i32
    %c0_i32_1 = arith.constant 0 : i32
    return %arg1, %c0_i32, %c0_i32_0 : i32, i32, i32
  }
  func.func @transform_7(%arg0: i32, %arg1: i32) -> (i32, i32, i32) {
    %c0_i32 = arith.constant 0 : i32
    %c0_i32_0 = arith.constant 0 : i32
    %c0_i32_1 = arith.constant 0 : i32
    return %arg1, %c0_i32, %c0_i32_0 : i32, i32, i32
  }
  func.func @transform_8(%arg0: i32, %arg1: i32) -> (i32, i32, i32) {
    %c0_i32 = arith.constant 0 : i32
    %c0_i32_0 = arith.constant 0 : i32
    %c0_i32_1 = arith.constant 0 : i32
    return %arg1, %c0_i32, %c0_i32_0 : i32, i32, i32
  }
  func.func @transform_9(%arg0: i32, %arg1: i32) -> (i32, i32, i32) {
    %c0_i32 = arith.constant 0 : i32
    %c0_i32_0 = arith.constant 0 : i32
    %c0_i32_1 = arith.constant 0 : i32
    return %arg1, %c0_i32, %c0_i32_0 : i32, i32, i32
  }
  func.func @transform_10(%arg0: i32, %arg1: i32) -> (i32, i32, i32) {
    %c0_i32 = arith.constant 0 : i32
    %c0_i32_0 = arith.constant 0 : i32
    %c0_i32_1 = arith.constant 0 : i32
    return %arg1, %c0_i32, %c0_i32_0 : i32, i32, i32
  }
  func.func @transform_11(%arg0: i32, %arg1: i32) -> (i32, i32, i32) {
    %c0_i32 = arith.constant 0 : i32
    %c0_i32_0 = arith.constant 0 : i32
    %c0_i32_1 = arith.constant 0 : i32
    return %arg1, %c0_i32, %c0_i32_0 : i32, i32, i32
  }
  func.func @transform_12(%arg0: i32, %arg1: i32) -> (i32, i32, i32) {
    %c0_i32 = arith.constant 0 : i32
    %c0_i32_0 = arith.constant 0 : i32
    %c0_i32_1 = arith.constant 0 : i32
    return %arg1, %c0_i32, %c0_i32_0 : i32, i32, i32
  }
  func.func @transform_13(%arg0: i32, %arg1: i32) -> (i32, i32, i32) {
    %c0_i32 = arith.constant 0 : i32
    %c0_i32_0 = arith.constant 0 : i32
    %c0_i32_1 = arith.constant 0 : i32
    return %arg1, %c0_i32, %c0_i32_0 : i32, i32, i32
  }
  func.func @transform_14(%arg0: i32, %arg1: i32) -> (i32, i32, i32) {
    %c0_i32 = arith.constant 0 : i32
    %c0_i32_0 = arith.constant 0 : i32
    %c0_i32_1 = arith.constant 0 : i32
    return %arg1, %c0_i32, %c0_i32_0 : i32, i32, i32
  }
  func.func @transform_15(%arg0: i32, %arg1: i32) -> (i32, i32, i32) {
    %c0_i32 = arith.constant 0 : i32
    %c0_i32_0 = arith.constant 0 : i32
    %c0_i32_1 = arith.constant 0 : i32
    return %arg1, %c0_i32, %c0_i32_0 : i32, i32, i32
  }
  func.func @transform_16(%arg0: i32, %arg1: i32) -> (i32, i32, i32) {
    %c0_i32 = arith.constant 0 : i32
    %c0_i32_0 = arith.constant 0 : i32
    %c0_i32_1 = arith.constant 0 : i32
    return %arg1, %c0_i32, %c0_i32_0 : i32, i32, i32
  }
  func.func @transform_17(%arg0: i32, %arg1: i32) -> (i32, i32) {
    %c0_i32 = arith.constant 0 : i32
    %c0_i32_0 = arith.constant 0 : i32
    %c0_i32_1 = arith.constant 0 : i32
    return %c0_i32, %c0_i32_0 : i32, i32
  }
  func.func @transform_18(%arg0: i32, %arg1: i32) -> (i32, i32) {
    %c0_i32 = arith.constant 0 : i32
    %c0_i32_0 = arith.constant 0 : i32
    %c0_i32_1 = arith.constant 0 : i32
    return %c0_i32, %c0_i32_0 : i32, i32
  }
  func.func @transform_19(%arg0: i32, %arg1: i32) -> (i32, i32, i32) {
    %c0_i32 = arith.constant 0 : i32
    %c0_i32_0 = arith.constant 0 : i32
    %c0_i32_1 = arith.constant 0 : i32
    return %arg0, %c0_i32, %c0_i32_0 : i32, i32, i32
  }
}

</mosaic_0001>

<bundles_post_ra>
// kernel: tpu_custom_call.1
= control target key start
LH: loop header
LB: loop body
LE: loop exit
PB: predicated region body
PF: predicated region fallthrough
CT: control target
= control target key end

     0   :  { %s4149_s0 = inlined_call_operand.vmem [shape: f32[4,8,128], index: 0, kind: input, shape index: {}]   ;;  %s4150_s1 = inlined_call_operand.vmem [shape: f32[4,8,1], index: 1, kind: input, shape index: {}]   ;;  %s4151_s2 = inlined_call_operand.hbm [shape: f32[8,128], index: 2, kind: input, shape index: {}]   ;;  %s4152_s3 = inlined_call_operand.vmem [shape: f32[2,1,128], index: 3, kind: input, shape index: {}]   ;;  %s4153_s4 = inlined_call_operand.vmem [shape: f32[2,1,128], index: 4, kind: input, shape index: {}]   ;;  %s4154_s5 = inlined_call_operand.hbm [shape: bf16[2,128,128], index: 5, kind: input, shape index: {}]   ;;  %s4155_s6 = inlined_call_operand.vmem [shape: f32[2,1,128], index: 6, kind: input, shape index: {}]   ;;  %s4156_s7 = inlined_call_operand.hbm [shape: bf16[2,128,256], index: 7, kind: input, shape index: {}]   ;;  %s4157_s8 = inlined_call_operand.vmem [shape: f32[2,1,256], index: 8, kind: input, shape index: {}]   ;;  %s4158_s9 = inlined_call_operand.hbm [shape: bf16[2,128,128], index: 9, kind: input, shape index: {}]   ;;  %s4159_s10 = inlined_call_operand.vmem [shape: f32[2,1,128], index: 10, kind: input, shape index: {}]   ;;  %s4160_s11 = inlined_call_operand.vmem [shape: f32[2,1,128], index: 11, kind: input, shape index: {}]   ;;  %s4161_s12 = inlined_call_operand.vmem [shape: f32[2,1,128], index: 12, kind: input, shape index: {}]   ;;  %s4162_s13 = inlined_call_operand.hbm [shape: bf16[2,128,128], index: 13, kind: input, shape index: {}]   ;;  %s4163_s14 = inlined_call_operand.vmem [shape: f32[2,1,128], index: 14, kind: input, shape index: {}]   ;;  %s4164_s15 = inlined_call_operand.hbm [shape: bf16[2,128,128], index: 15, kind: input, shape index: {}]   ;;  %s4165_s16 = inlined_call_operand.vmem [shape: f32[2,1,128], index: 16, kind: input, shape index: {}]   ;;  %s4166_s17 = inlined_call_operand.vmem [shape: f32[1,128], index: 17, kind: input, shape index: {}]   ;;  %s4167_s18 = inlined_call_operand.vmem [shape: f32[1,128], index: 18, kind: input, shape index: {}]   ;;  %s4168_s19 = inlined_call_operand.hbm [shape: f32[4,8,128], index: 19, kind: output, shape index: {}]  }
   0x1   :  { %4192 = sst [smem:[#allocation36_spill]] %s4149_s0 }
   0x2   :  { %4193 = sst [smem:[#allocation37_spill]] %s4150_s1 }
   0x3   :  { %4194 = sst [smem:[#allocation38_spill]] %s4151_s2 }
   0x4   :  { %4195 = sst [smem:[#allocation39_spill]] %s4152_s3 }
   0x5   :  { %4196 = sst [smem:[#allocation40_spill]] %s4153_s4 }
   0x6   :  { %4197 = sst [smem:[#allocation41_spill]] %s4154_s5 }
   0x7   :  { %4198 = sst [smem:[#allocation42_spill]] %s4155_s6 }
   0x8   :  { %4199 = sst [smem:[#allocation43_spill]] %s4156_s7 }
   0x9   :  { %4200 = sst [smem:[#allocation44_spill]] %s4157_s8 }
   0xa   :  { %4201 = sst [smem:[#allocation45_spill]] %s4158_s9 }
   0xb   :  { %4202 = sst [smem:[#allocation46_spill]] %s4159_s10 }
   0xc   :  { %4203 = sst [smem:[#allocation47_spill]] %s4160_s11 }
   0xd   :  { %4204 = sst [smem:[#allocation48_spill]] %s4161_s12 }
   0xe   :  { %4205 = sst [smem:[#allocation49_spill]] %s4162_s13 }
   0xf   :  { %4206 = sst [smem:[#allocation50_spill]] %s4163_s14 }
  0x10   :  { %4207 = sst [smem:[#allocation51_spill]] %s4164_s15 }
  0x11   :  { %4208 = sst [smem:[#allocation52_spill]] %s4165_s16 }
  0x12   :  { %4209 = sst [smem:[#allocation53_spill]] %s4166_s17 }
  0x13   :  { %4210 = sst [smem:[#allocation54_spill]] %s4167_s18 }
  0x14   :  { %4211 = sst [smem:[#allocation55_spill]] %s4168_s19 }
  0x15   :  { %24 = vsyncpa [#allocation4], 0 }
  0x16   :  { %25 = vsyncpa [#allocation7], 0 }
  0x17   :  { %27 = vsyncpa [#allocation7 + $0x1], 0 }
  0x18   :  { %28 = vsyncpa [#allocation10], 0 }
  0x19   :  { %30 = vsyncpa [#allocation10 + $0x1], 0 }
  0x1a   :  { %31 = vsyncpa [#allocation13], 0 }
  0x1b   :  { %33 = vsyncpa [#allocation13 + $0x1], 0 }
  0x1c   :  { %34 = vsyncpa [#allocation5], 0 }
  0x1d   :  { %36 = vsyncpa [#allocation5 + $0x1], 0  ;;  %s3488_s0 = smov 0   ;;  %s3490_s30 = smov 0  }
  0x1e   :  { %s3492_s20 = smov 0   ;;  %s3494_s21 = smov 0  }
  0x1f   :  { %s3496_s1 = smov 0   ;;  %s3498_s22 = smov 0  }
  0x20   :  { %s3500_s2 = smov 0   ;;  %s3502_s23 = smov 0  }
  0x21   :  { %s3504_s24 = smov 0   ;;  %s3506_s25 = smov 0  }
  0x22   :  { %s3508_s3 = smov 0  }
  0x23 LB: > { %4212 = sst [smem:[#allocation20_spill]] %s3327_s0  ;;  %s51_s26 = sadd.s32 1, %s3359_s24  ;;  %s3367_s3 = sphi %s3508_s3, %s42_s3   ;;  %s3363_s25 = sphi %s3506_s25, %s4295_s25   ;;  %s3359_s24 = sphi %s3504_s24, %s4294_s24   ;;  %s3355_s23 = sphi %s3502_s23, %s4293_s23   ;;  %s3351_s2 = sphi %s3500_s2, %s4292_s2   ;;  %s3347_s22 = sphi %s3498_s22, %s4291_s22   ;;  %s3343_s1 = sphi %s3496_s1, %s4290_s1   ;;  %s3339_s21 = sphi %s3494_s21, %s4289_s21   ;;  %s3335_s20 = sphi %s3492_s20, %s4288_s20   ;;  %s3331_s30 = sphi %s3490_s30, %s4287_s30   ;;  %s3327_s0 = sphi %s3488_s0, %s4286_s0  }
  0x24   : > { %4213 = sst [smem:[#allocation21_spill]] %s3331_s30  ;;  %s186_s27 = sadd.s32 1, %s3347_s22 }
  0x25   : > { %4214 = sst [smem:[#allocation22_spill]] %s3335_s20  ;;  %p3545_p0 = scmp.ge.s32.totalorder %s51_s26, 2 }
  0x26   : > { %4215 = sst [smem:[#allocation23_spill]] %s3343_s1  ;;  %p193_p1 = scmp.ne.s32.totalorder %s3347_s22, %s3343_s1 }
  0x27   : > { %4216 = sst [smem:[#allocation24_spill]] %s3347_s22  ;;  %p194_p2 = scmp.eq.s32.totalorder %s3367_s3, 0 }
  0x28   : > { %4217 = sst [smem:[#allocation25_spill]] %s3351_s2  ;;  %s4297_s26 = smov (%p3545_p0, %s51_s26), 0 }
  0x29   : > { %4218 = sst [smem:[#allocation26_spill]] %s3355_s23  ;;  %p195_p3 = por %p194_p2, %p193_p1 }
  0x2a   : > { %4219 = sst [smem:[#allocation27_spill]] %s3359_s24  ;;  %p2878_p4 = scmp.lt.s32.totalorder %s3367_s3, 4 }
  0x2b   : > { %4220 = sst [smem:[#allocation28_spill]] %s3363_s25  ;;  %s183_s29 = ssub.s32 %s3359_s24, %s4297_s26 }
  0x2c   : > { %4221 = sst [smem:[#allocation29_spill]] %s3367_s3  ;;  %p184_p5 = scmp.eq.s32.totalorder %s183_s29, 0 }
  0x2d   : > { %4223 = sst [smem:[#allocation30_spill]] %s4297_s26  ;;  %s3561_s18 = sand.u32 1, %s3347_s22  }
  0x2e   : > { %s3564_s17 = sshll.u32 %s3359_s24, 10  ;;  %s3570_s14 = sshll.u32 %s3561_s18, 6 }
  0x2f   : > { %s3567_s16 = scalar_select %p184_p5, %s3347_s22, %s186_s27  }
  0x30   : > { %s4225_s5 = sld [smem:[#allocation41_spill]]  ;;  %p3576_p6 = pnand %p2878_p4, %p195_p3 }
  0x31   : > { %4224 = sst [smem:[#allocation31_spill]] %s3567_s16  ;;  %s628_s29 = scalar_lea.vmem [#allocation6], %s3570_s14 }
  0x32   : > { %s635_s19 = sshll.u32 %s628_s29, 4  ;;  %s4227_s26 = sand.u32 1, %s3367_s3   ;;  %s636_s19 = int_to_ptr.vmem [resolvable:$true] %s635_s19 }
  0x33   : > { %s3583_s6 = scalar_lea.sflag [#allocation7], %s4227_s26  ;;  %p3587_p7 = pneg %p3576_p6 }
  0x34   : > { %s3082_s11 = scalar_lea.vmem %s636_s19, 1024  ;;  %s3369_s12 = smov [#allocation6]  }
  0x35   : > { %p3083_p8 = scmp.ne.s32.totalorder %s636_s19, %s3082_s11 }
  0x36   : > { %s634_s10 = scalar_lea.hbm %s4225_s5, %s3564_s17  ;;  %s3087_s5 = sshll.u32 %s3369_s12, 4  ;;  %s3088_s5 = int_to_ptr.vmem [resolvable:$false] %s3087_s5 }
  0x37   : > { %p3085_p9 = pnand %p3083_p8, %p3587_p7  ;;  %s3089_s16 = scalar_lea.vmem %s3088_s5, 2048 }
  0x38   : > { %p3090_p11 = scmp.lt.s32.totalorder %s636_s19, %s3088_s5  ;;  %p3091_p12 = scmp.lt.s32.totalorder %s3089_s16, %s3082_s11 }
  0x39   : > { %p3086_p10 = pneg %p3085_p9 }
  0x3a   : > { %p3092_p13 = por %p3091_p12, %p3090_p11 }
  0x3c   : > { %p3093_p1 = pnand %p3092_p13, %p3086_p10 }
  0x3e   : > { %3096 = shalt.err (!%p3093_p1)
}
  0x3f   : > { %s4173_s26 = smov 64   ;;  %s4175_s29 = smov 4  }
  0x40   : > { %2860 = dma.hbm_to_vmem [thread:$0]  (!%p3576_p6), %s634_s10, 1024, %s636_s19, %s3583_s6, %s4173_s26, %s4173_s26, %s4175_s29  }
  0x41   : > { %s4229_s9 = sld [smem:[#allocation45_spill]]  ;;  %s683_s16 = scalar_lea.vmem [#allocation9], %s3570_s14 }
  0x42   : > { %s690_s11 = sshll.u32 %s683_s16, 4  ;;  %s4230_s4 = sand.u32 1, %s3367_s3   ;;  %s691_s11 = int_to_ptr.vmem [resolvable:$true] %s690_s11 }
  0x43   : > { %s3606_s2 = scalar_lea.sflag [#allocation10], %s4230_s4  ;;  %s3110_s23 = scalar_lea.vmem %s691_s11, 1024 }
  0x44   : > { %p3111_p2 = scmp.ne.s32.totalorder %s691_s11, %s3110_s23  ;;  %s3372_s15 = smov [#allocation9]  }
  0x45   : > { %s3115_s13 = sshll.u32 %s3372_s15, 4  ;;  %s3116_s13 = int_to_ptr.vmem [resolvable:$false] %s3115_s13 }
  0x46   : > { %p3113_p3 = pnand %p3111_p2, %p3587_p7  ;;  %s3117_s7 = scalar_lea.vmem %s3116_s13, 2048 }
  0x47   : > { %s689_s5 = scalar_lea.hbm %s4229_s9, %s3564_s17  ;;  %p3118_p5 = scmp.lt.s32.totalorder %s691_s11, %s3116_s13 }
  0x48   : > { %p3114_p4 = pneg %p3113_p3  ;;  %p3119_p8 = scmp.lt.s32.totalorder %s3117_s7, %s3110_s23 }
  0x4a   : > { %p3120_p9 = por %p3119_p8, %p3118_p5 }
  0x4c   : > { %p3121_p10 = pnand %p3120_p9, %p3114_p4 }
  0x4e   : > { %3124 = shalt.err (!%p3121_p10)
}
  0x4f   : > { %2866 = dma.hbm_to_vmem [thread:$0]  (!%p3576_p6), %s689_s5, 1024, %s691_s11, %s3606_s2, %s4173_s26, %s4173_s26, %s4175_s29  }
  0x50   : > { %s3617_s4 = sadd.s32 4294967295, %s3367_s3   ;;  %s2544_s7 = sadd.s32 4294967294, %s3367_s3  }
  0x51   : > { %s54_s10 = sadd.s32 1, %s3363_s25  ;;  %p199_p11 = scmp.ne.s32.totalorder %s3343_s1, %s3339_s21 }
  0x52   : > { %s4299_s10 = smov (!%p3545_p0, %s54_s10), %s3363_s25  ;;  %p4178_p12 = scmp.eq.s32.totalorder %s3617_s4, 0 }
  0x53   : > { %s540_s13 = sadd.s32 1, %s3335_s20  ;;  %p56_p13 = scmp.ge.s32.totalorder %s4299_s10, 2 }
  0x54   : > { %p550_p1 = scmp.ne.s32.totalorder %s3335_s20, %s3331_s30  ;;  %p3632_p2 = por %p4178_p12, %p199_p11 }
  0x55   : > { %p551_p3 = scmp.eq.s32.totalorder %s3617_s4, 3  ;;  %s4301_s10 = smov (%p56_p13, %s4299_s10), 0 }
  0x56   : > { %4232 = sst [smem:[#allocation32_spill]] %s4301_s10  ;;  %p556_p0 = scmp.ne.s32.totalorder %s3331_s30, %s3327_s0 }
  0x57   : > { %p3639_p4 = por %p551_p3, %p550_p1  ;;  %s537_s21 = ssub.s32 %s3363_s25, %s4301_s10 }
  0x58   : > { %p557_p5 = scmp.eq.s32.totalorder %s2544_s7, 3  ;;  %p538_p8 = scmp.eq.s32.totalorder %s537_s21, 0 }
  0x59   : > { %s4233_s19 = scalar_select %p3639_p4, 1, 0 }
  0x5a   : > { %p2545_p9 = scmp.ge.s32.totalorder %s3367_s3, 1  ;;  %p3648_p10 = por %p557_p5, %p556_p0 }
  0x5b   : > { %4234 = sst [smem:[#allocation33_spill]] %s4233_s19  ;;  %p564_p11 = scmp.lt.s32.totalorder %s3367_s3, 5 }
  0x5c   : > { %s4235_s22 = scalar_select %p3648_p10, 1, 0 }
  0x5d   : > { %s3654_s23 = scalar_select %p538_p8, %s3335_s20, %s540_s13  }
  0x5e   : > { %4236 = sst [smem:[#allocation34_spill]] %s4235_s22  ;;  %p3656_p13 = pnand %p2545_p9, %p564_p11 }
  0x5f   : > { %4237 = sst [smem:[#allocation35_spill]] %s3654_s23  ;;  %s2551_s12 = sshll.u32 %s3561_s18, 7 }
  0x60   : > { %p2853_p1 = pneg %p3656_p13  ;;  %s3373_s5 = smov [#allocation3]  }
  0x61   : > { %s577_s16 = sshll.u32 %s3373_s5, 4  ;;  %s2652_s7 = sshll.u32 %s3359_s24, 11  ;;  %s578_s16 = int_to_ptr.vmem [resolvable:$true] %s577_s16 }
  0x62   : > { %p3665_p3 = pnand %p2853_p1, %p4178_p12  ;;  %s4240_s26 = sld [smem:[#allocation43_spill]] }
  0x63   : > { %s655_s9 = scalar_lea.vmem [#allocation8], %s2551_s12  ;;  %s3136_s5 = scalar_lea.vmem %s578_s16, 128 }
  0x64   : > { %s662_s10 = sshll.u32 %s655_s9, 4  ;;  %p3127_p0 = pneg %p3665_p3  ;;  %s3675_s10 = int_to_ptr.vmem [resolvable:$true] %s662_s10 }
  0x65   : > { %p3137_p5 = scmp.ne.s32.totalorder %s578_s16, %s3136_s5  ;;  %p3144_p11 = scmp.lt.s32.totalorder %s578_s16, %s578_s16 }
  0x66   : > { %p3145_p1 = scmp.lt.s32.totalorder %s3136_s5, %s3136_s5 }
  0x67   : > { %p3139_p8 = pnand %p3137_p5, %p3127_p0 }
  0x68   : > { %s3673_s29 = scalar_lea.hbm %s4240_s26, %s2652_s7  ;;  %p3146_p12 = por %p3145_p1, %p3144_p11 }
  0x69   : > { %p3140_p9 = pneg %p3139_p8 }
  0x6b   : > { %p3147_p10 = pnand %p3146_p12, %p3140_p9 }
  0x6d   : > { %3150 = shalt.err (!%p3147_p10)
}
  0x6e   : > { %s4241_s7 = sld [smem:[#allocation38_spill]]  ;;  %s3164_s9 = scalar_lea.vmem %s3675_s10, 2048 }
  0x6f   : > { %p3165_p4 = scmp.ne.s32.totalorder %s3675_s10, %s3164_s9  ;;  %s3374_s12 = smov [#allocation8]  }
  0x70   : > { %s3169_s21 = sshll.u32 %s3374_s12, 4  ;;  %s3170_s21 = int_to_ptr.vmem [resolvable:$false] %s3169_s21 }
  0x71   : > { %p3167_p0 = pnand %p3165_p4, %p3587_p7  ;;  %s3171_s5 = scalar_lea.vmem %s3170_s21, 4096 }
  0x72   : > { %p3172_p12 = scmp.lt.s32.totalorder %s3675_s10, %s3170_s21  ;;  %p3173_p10 = scmp.lt.s32.totalorder %s3171_s5, %s3164_s9 }
  0x73   : > { %p3168_p5 = pneg %p3167_p0 }
  0x74   : > { %2856 = dma.hbm_to_vmem [thread:$0]  (!%p3665_p3), %s4241_s7, 128, %s578_s16, [#allocation4]  }
  0x75   : > { %p3174_p8 = por %p3173_p10, %p3172_p12 }
  0x77   : > { %p3175_p9 = pnand %p3174_p8, %p3168_p5 }
  0x79   : > { %3178 = shalt.err (!%p3175_p9)
}
  0x7a   : > { %s3375_s11 = smov 128   ;;  %s3376_s16 = smov 8  }
  0x7b   : > { %2863 = dma.hbm_to_vmem [thread:$0]  (!%p3576_p6), %s3673_s29, 2048, %s3675_s10, %s3583_s6, %s3375_s11, %s3375_s11, %s3376_s16  }
  0x7c   : > { %s4242_s7 = sld [smem:[#allocation49_spill]]  ;;  %s722_s21 = scalar_lea.vmem [#allocation11], %s3570_s14 }
  0x7d   : > { %s729_s9 = sshll.u32 %s722_s21, 4  ;;  %s3377_s25 = smov [#allocation11]   ;;  %s730_s9 = int_to_ptr.vmem [resolvable:$true] %s729_s9 }
  0x7e   : > { %s3192_s5 = scalar_lea.vmem %s730_s9, 1024  ;;  %s3197_s24 = sshll.u32 %s3377_s25, 4  ;;  %s3198_s24 = int_to_ptr.vmem [resolvable:$false] %s3197_s24 }
  0x7f   : > { %p3193_p4 = scmp.ne.s32.totalorder %s730_s9, %s3192_s5  ;;  %s3199_s23 = scalar_lea.vmem %s3198_s24, 2048 }
  0x80   : > { %p3200_p1 = scmp.lt.s32.totalorder %s730_s9, %s3198_s24  ;;  %p3201_p0 = scmp.lt.s32.totalorder %s3199_s23, %s3192_s5 }
  0x81   : > { %p3195_p3 = pnand %p3193_p4, %p3587_p7 }
  0x82   : > { %s728_s12 = scalar_lea.hbm %s4242_s7, %s3564_s17  ;;  %p3202_p5 = por %p3201_p0, %p3200_p1 }
  0x83   : > { %p3196_p11 = pneg %p3195_p3 }
  0x85   : > { %p3203_p12 = pnand %p3202_p5, %p3196_p11 }
  0x87   : > { %3206 = shalt.err (!%p3203_p12)
}
  0x88   : > { %s4243_s6 = smov 4   ;;  %s4244_s29 = smov 64  }
  0x89   : > { %2869 = dma.hbm_to_vmem [thread:$0]  (!%p3576_p6), %s728_s12, 1024, %s730_s9, %s3606_s2, %s4244_s29, %s4244_s29, %s4243_s6  }
  0x8a   : > { %s4245_s11 = sld [smem:[#allocation51_spill]]  ;;  %s749_s24 = scalar_lea.vmem [#allocation12], %s3570_s14 }
  0x8b   : > { %s756_s23 = sshll.u32 %s749_s24, 4  ;;  %s746_s13 = scalar_lea.sflag [#allocation13], %s3561_s18  ;;  %s757_s23 = int_to_ptr.vmem [resolvable:$true] %s756_s23 }
  0x8c   : > { %s3220_s26 = scalar_lea.vmem %s757_s23, 1024  ;;  %s3378_s7 = smov [#allocation12]  }
  0x8d   : > { %p3221_p10 = scmp.ne.s32.totalorder %s757_s23, %s3220_s26  ;;  %s3225_s21 = sshll.u32 %s3378_s7, 4  ;;  %s3226_s21 = int_to_ptr.vmem [resolvable:$false] %s3225_s21 }
  0x8e   : > { %s3227_s5 = scalar_lea.vmem %s3226_s21, 2048  ;;  %p3228_p4 = scmp.lt.s32.totalorder %s757_s23, %s3226_s21 }
  0x8f   : > { %p3223_p8 = pnand %p3221_p10, %p3587_p7  ;;  %p3229_p3 = scmp.lt.s32.totalorder %s3227_s5, %s3220_s26 }
  0x90   : > { %s755_s16 = scalar_lea.hbm %s4245_s11, %s3564_s17 }
  0x91   : > { %p3224_p9 = pneg %p3223_p8  ;;  %p3230_p11 = por %p3229_p3, %p3228_p4 }
  0x93   : > { %p3231_p1 = pnand %p3230_p11, %p3224_p9 }
  0x95   : > { %3234 = shalt.err (!%p3231_p1)
}
  0x96   : > { %2872 = dma.hbm_to_vmem [thread:$0]  (!%p3576_p6), %s755_s16, 1024, %s757_s23, %s746_s13, %s4244_s29, %s4244_s29, %s4243_s6  }
  0x97   : > { %774 = sbr.rel (%p3656_p13) target bundleno = 3462 (0xd86), region = 96  ;;  %p4246_p7 = scmp.eq.s32.totalorder (!%p3656_p13), %s3617_s4, 0 }
  0x9c   : > { %3306 = dma.done.wait (%p4246_p7), [#allocation4], 128   ;;  %p4247_p0 = pmov %p4246_p7 }
  0x9d   : > { %s780_s14 = sand.u32 1, %s3617_s4   ;;  %s782_s17 = sand.u32 1, %s3343_s1  }
  0x9e   : > { %3308 = vsyncadd (%p4247_p0), [#allocation4], 4294967168  ;;  %s2565_s18 = sshll.u32 %s782_s17, 6  ;;  %s781_s8 = scalar_lea.sflag [#allocation7], %s780_s14 }
  0x9f   : > { %s3728_s2 = scalar_lea.vmem [#allocation6], %s2565_s18 }
  0xa0   : > { %3310 = dma.done.wait (%p3632_p2), %s781_s8, 3072  }
  0xa1   : > { %3312 = vsyncadd (%p3632_p2), %s781_s8, 4294964224  ;;  %s2566_s27 = sshll.u32 %s782_s17, 7  ;;  %s799_s12 = scalar_lea.sflag [#allocation10], %s780_s14 }
  0xa2   : > { %s3734_s28 = scalar_lea.vmem [#allocation8], %s2566_s27  ;;  %s3736_s9 = scalar_lea.vmem [#allocation9], %s2565_s18 }
  0xa3   : > { %3314 = dma.done.wait (%p3632_p2), %s799_s12, 2048  }
  0xa4   : > { %3316 = vsyncadd (%p3632_p2), %s799_s12, 4294965248  ;;  %s3742_s4 = scalar_lea.vmem [#allocation11], %s2565_s18  ;;  %s817_s6 = scalar_lea.sflag [#allocation13], %s782_s17 }
  0xa5   : > { %s3744_s29 = scalar_lea.vmem [#allocation12], %s2565_s18 }
  0xa6   : > { %3318 = dma.done.wait (%p3632_p2), %s817_s6, 1024  }
  0xa7   : > { %3320 = vsyncadd (%p3632_p2), %s817_s6, 4294966272  ;;  %s4248_s10 = sld [smem:[#allocation26_spill]]  ;;  %s4182_s16 = sand.u32 1, %s3331_s30  }
  0xa8   : > { %s4249_s25 = sld [smem:[#allocation25_spill]]  ;;  %s2570_s24 = sshll.u32 %s4182_s16, 4 }
  0xa9   : > { %s4250_s7 = sld [smem:[#allocation36_spill]] }
  0xaa   : > { %s4251_s17 = sld [smem:[#allocation37_spill]] }
  0xab   : > { %s4256_s3 = sld [smem:[#allocation46_spill]] }
  0xac   : > { %s4257_s12 = sld [smem:[#allocation47_spill]] }
  0xad   : > { %s2571_s11 = sshll.u32 %s4248_s10, 1  ;;  %s4258_s10 = sld [smem:[#allocation48_spill]] }
  0xae   : > { %p934_p6 = scmp.lt.s32.totalorder %s2571_s11, 3  ;;  %p945_p13 = scmp.lt.s32.totalorder %s4249_s25, 1 }
  0xaf   : > { %s4259_s13 = sld [smem:[#allocation50_spill]]  ;;  %p2576_p2 = scmp.ne.s32.totalorder %s4249_s25, 0 }
  0xb0   : > { %s4303_s11 = smov (!%p934_p6, %s2571_s11), 3 }
  0xb1   : > { %s3756_s23 = scalar_select %p945_p13, %s4249_s25, 1 }
  0xb2   : > { %s2572_s15 = sshll.u32 %s4303_s11, 3 }
  0xb3   : > { %s937_s21 = scalar_lea.vmem %s4250_s7, %s2572_s15  ;;  %s943_s18 = scalar_lea.vmem %s4251_s17, %s2572_s15 }
  0xb4   : > { %v3764_v0 = vld [vmem:[%s943_s18] sm:$0xff]  ;;  %v3766_v1 = vld [vmem:[%s943_s18 + $0x8] sm:$0xff]  ;;  %s2575_s7 = sshll.u32 %s3756_s23, 1  ;;  %s4255_s15 = sld [smem:[#allocation44_spill]] }
  0xb5   : > { %s960_s19 = scalar_lea.vmem %s4256_s3, %s3756_s23  ;;  %s963_s6 = scalar_lea.vmem %s4257_s12, %s3756_s23 }
  0xb6   : > { %s966_s11 = scalar_lea.vmem %s4258_s10, %s3756_s23  ;;  %s969_s26 = scalar_lea.vmem %s4259_s13, %s3756_s23 }
  0xba   : > { %s3784_s14 = scalar_lea.vmem %s4255_s15, %s2575_s7  ;;  %s4260_s7 = sld [smem:[#allocation52_spill]] }
  0xbb   : > { %s3806_s15 = scalar_lea.vmem [#allocation14], %s2570_s24 }
  0xbc   : > { %980 = sbr.rel (%p2576_p2) target bundleno = 326 (0x146), region = 124 }
  0xc0   : > { %s972_s5 = scalar_lea.vmem %s4260_s7, %s3756_s23 }
  0xc1   : > { %v3379_v2 = vmov 0   ;;  %v981_v3 = vld [vmem:[%s937_s21] sm:$0xff]  ;;  %v985_v5 = vld [vmem:[#allocation3] sm:$0xff]  ;;  %v982_v6 = vld [vmem:[%s937_s21 + $0x8] sm:$0xff] }
  0xc2   : > { %2982 = vset.pattern.permute.xlu0 %v3379_v2  ;;  %v983_v4 = vmul.f32 5.656854, %v981_v3  ;;  %v984_v8 = vmul.f32 5.656854, %v982_v6 }
  0xc3   : > { %990 = vperm.xlu0 %2982, %v3764_v0  }
  0xc4   : > { %v986_v7 = vadd.f32 %v985_v5, %v983_v4  ;;  %v987_v11 = vadd.f32 %v985_v5, %v984_v8 }
  0xc7   : > { %995 = vperm.xlu0 %2982, %v3766_v1  }
 0x13e   : > { %v991_v9 = vpop.permute.xlu0 %990 }
 0x13f   : > { %v998_v10 = vmul.f32 %v991_v9, %v986_v7 }
 0x141   : > { %1000 = vst [vmem:[%s3806_s15] sm:$0xff] %v998_v10 }
 0x142   : > { %v996_v12 = vpop.permute.xlu0 %995 }
 0x143   : > { %v999_v13 = vmul.f32 %v996_v12, %v987_v11 }
 0x145   : > { %1001 = vst [vmem:[%s3806_s15 + $0x8] sm:$0xff] %v999_v13 }
 0x146 PF: > { %v3380_v16 = vmov 0.0   ;;  %v2985_v17 = vld [vmem:[%s3734_s28 + $0x74] ss:$8 sps:$4 sm:$0xff]   ;;  %v2987_v18 = vld [vmem:[%s3734_s28 + $0x70] ss:$8 sps:$4 sm:$0xff]   ;;  %v1004_v27 = vlaneseq  ;;  %v3005_v44 = vld [vmem:[%s3728_s2 + $0x28] sm:$0xff]  }
 0x147   : > { %2709 = vmatprep.subr.bf16.mxu0 %v3380_v16  ;;  %v2988_v19 = vld [vmem:[%s3734_s28 + $0x64] ss:$8 sps:$4 sm:$0xff]   ;;  %1273 = vmatprep.subr.bf16.mxu1 %v2985_v17  ;;  %v2990_v20 = vld [vmem:[%s3734_s28 + $0x60] ss:$8 sps:$4 sm:$0xff]   ;;  %v2997_v21 = vld [vmem:[%s3728_s2 + $0x38] sm:$0xff]   ;;  %v3381_v50 = vmov 0  }
 0x148   : > { %v3814_v14 = vld [vmem:[%s3806_s15] sm:$0xff]  ;;  %1274 = vmatpush1.bf16.msra.mxu1 %v2987_v18  ;;  %2710 = vmatpush3.bf16.msra.mxu0 %v2997_v21  ;;  %v3834_v28 = vand.u32 127, %v1004_v27  ;;  %vm3382_vm1 = vmmov 0   ;;  %v3013_v51 = vld [vmem:[%s3728_s2 + $0x18] sm:$0xff]   ;;  %v3015_v54 = vld [vmem:[%s3728_s2 + $0x8] sm:$0xff]   ;;  %s4263_s21 = sld [smem:[#allocation40_spill]] }
 0x149   : > { %1011 = vadd.xlane.f32.xlu0 %v3814_v14  ;;  %v2991_v22 = vld [vmem:[%s3734_s28 + $0x54] ss:$8 sps:$4 sm:$0xff]   ;;  %1275 = vmatprep.subr.bf16.mxu1 %v2988_v19  ;;  %v2993_v23 = vld [vmem:[%s3734_s28 + $0x50] ss:$8 sps:$4 sm:$0xff]   ;;  %v2994_v24 = vld [vmem:[%s3734_s28 + $0x44] ss:$8 sps:$4 sm:$0xff]  }
 0x14a   : > { %2711 = vmatprep.subr.bf16.mxu0 %v3380_v16  ;;  %v2996_v25 = vld [vmem:[%s3734_s28 + $0x40] ss:$8 sps:$4 sm:$0xff]   ;;  %v2998_v26 = vld [vmem:[%s3734_s28 + $0x34] ss:$8 sps:$4 sm:$0xff]   ;;  %vm1006_vm0 = vcmp.lt.s32.totalorder %v3834_v28, 32  ;;  %1305 = vmatprep.mubr.bf16.mxu1 %v3381_v50  ;;  %v3891_v11 = vshrl.u32 %v1004_v27, 7 }
 0x14b   : > { %v3838_v31 = vsel %vm1006_vm0, 1.0, %v3380_v16  ;;  %v3000_v40 = vld [vmem:[%s3734_s28 + $0x30] ss:$8 sps:$4 sm:$0xff]   ;;  %v3002_v42 = vld [vmem:[%s3734_s28 + $0x24] ss:$8 sps:$4 sm:$0xff]   ;;  %2725 = vmatprep.mubr.msk.bf16.mxu0 %vm3382_vm1, %v3380_v16  ;;  %2983 = vset.pattern.permute.xlu0 %v3381_v50  ;;  %vm1326_vm2 = vcmask 130048  }
 0x14c   : > { %v3817_v15 = vld [vmem:[%s3806_s15 + $0x8] sm:$0xff]  ;;  %1276 = vmatpush1.bf16.msra.mxu1 %v2990_v20  ;;  %v3001_v41 = vld [vmem:[%s3728_s2 + $0x30] sm:$0xff]   ;;  %v3009_v47 = vld [vmem:[%s3728_s2 + $0x20] sm:$0xff]   ;;  %2984 = vset.pattern.permute.xlu1 %v3381_v50  ;;  %v1185_v12 = vsub.s32 0, %v3891_v11  ;;  %vm1453_vm3 = vcmask 1043456   ;;  %vm1318_vm4 = vcmp.le.s32.totalorder %v3834_v28, %v3891_v11  ;;  %vm1423_vm5 = vcmask 64512  }
 0x14d   : > { %1013 = vadd.xlane.f32.xlu0 %v3817_v15  ;;  %1277 = vmatprep.subr.bf16.mxu1 %v2991_v22  ;;  %v3004_v43 = vld [vmem:[%s3734_s28 + $0x20] ss:$8 sps:$4 sm:$0xff]   ;;  %v3006_v45 = vld [vmem:[%s3734_s28 + $0x14] ss:$8 sps:$4 sm:$0xff]   ;;  %v3008_v46 = vld [vmem:[%s3734_s28 + $0x10] ss:$8 sps:$4 sm:$0xff]   ;;  %v1052_v52 = vpack.c.bf16 %v3817_v15, %v3814_v14 }
 0x14e   : > { %2712 = vmatpush3.bf16.msra.mxu0 %v3001_v41  ;;  %v3010_v48 = vld [vmem:[%s3734_s28 + $0x4] ss:$8 sps:$4 sm:$0xff]   ;;  %v3012_v49 = vld [vmem:[%s3734_s28] ss:$8 sps:$4 sm:$0xff]   ;;  %v3014_v53 = vld [vmem:[%s3728_s2 + $0x10] sm:$0xff]   ;;  %s4264_s17 = scalar_lea.vmem %s4263_s21, %s3756_s23  ;;  %v1189_v22 = vsub.s32 1, %v3891_v11 }
 0x14f   : > { %2713 = vmatprep.subr.bf16.mxu0 %v3380_v16  ;;  %v3016_v55 = vld [vmem:[%s3728_s2] sm:$0xff]   ;;  %s4261_s2 = sld [smem:[#allocation39_spill]]  ;;  %v2579_v6 = vld [vmem:[%s4264_s17] ss:$0 sm:$0xff]  ;;  %s3383_s12 = smov 112   ;;  %vm1319_vm6 = vcmask 1047808  }
 0x150   : > { %1278 = vmatpush1.bf16.msra.mxu1 %v2993_v23  ;;  %v1181_v13 = vld [vmem:[%s3784_s14] sm:$0x3]  ;;  %s4265_s14 = sld [smem:[#allocation42_spill]]  ;;  %1320 = vst.msk [vmem:[#allocation2] sm:$0xff] %vm1319_vm6, %v3380_v16  ;;  %1321 = vst.msk [vmem:[#allocation2 + $0x8] sm:$0xff] %vm1319_vm6, %v3380_v16  ;;  %s3384_s16 = smov 16  }
 0x151   : > { %1279 = vmatprep.subr.bf16.mxu1 %v2994_v24  ;;  %vm1781_vm7 = vcmask 261248  }
 0x152   : > { %2714 = vmatpush3.bf16.msra.mxu0 %v3005_v44 }
 0x153   : > { %2715 = vmatprep.subr.bf16.mxu0 %v3380_v16 }
 0x154   : > { %1280 = vmatpush1.bf16.msra.mxu1 %v2996_v25 }
 0x155   : > { %1281 = vmatprep.subr.bf16.mxu1 %v2998_v26  ;;  %s4262_s28 = scalar_lea.vmem %s4261_s2, %s3756_s23  ;;  %v3906_v26 = vrot.slane %v1181_v13, %v1189_v22 }
 0x156   : > { %2716 = vmatpush3.bf16.msra.mxu0 %v3009_v47  ;;  %v2578_v2 = vld [vmem:[%s4262_s28] ss:$0 sm:$0xff]  ;;  %s4266_s27 = scalar_lea.vmem %s4265_s14, %s3756_s23 }
 0x157   : > { %2717 = vmatprep.subr.bf16.mxu0 %v3380_v16  ;;  %v2580_v24 = vld [vmem:[%s4266_s27] ss:$0 sm:$0xff] }
 0x158   : > { %1282 = vmatpush1.bf16.msra.mxu1 %v3000_v40 }
 0x159   : > { %1283 = vmatprep.subr.bf16.mxu1 %v3002_v42 }
 0x15a   : > { %2718 = vmatpush3.bf16.msra.mxu0 %v3013_v51 }
 0x15b   : > { %2719 = vmatprep.subr.bf16.mxu0 %v3380_v16 }
 0x15c   : > { %1284 = vmatpush1.bf16.msra.mxu1 %v3004_v43 }
 0x15d   : > { %1285 = vmatprep.subr.bf16.mxu1 %v3006_v45 }
 0x15e   : > { %2720 = vmatpush3.bf16.msra.mxu0 %v3014_v53 }
 0x15f   : > { %2721 = vmatprep.subr.bf16.mxu0 %v3380_v16 }
 0x160   : > { %1286 = vmatpush1.bf16.msra.mxu1 %v3008_v46 }
 0x161   : > { %1287 = vmatprep.subr.bf16.mxu1 %v3010_v48 }
 0x162   : > { %2722 = vmatpush3.bf16.msra.mxu0 %v3015_v54 }
 0x163   : > { %2723 = vmatprep.subr.bf16.mxu0 %v3380_v16 }
 0x164   : > { %1288 = vmatpush1.bf16.msra.mxu1 %v3012_v49 }
 0x165   : > { %2729 = vmatprep.subr.bf16.mxu1 %v3380_v16 }
 0x166   : > { %2724 = vmatpush3.bf16.msra.mxu0 %v3016_v55 }
 0x167   : > { %1306 = vmatmul.mubr.bf16.vlgmr.msra.gmra.mxu1 %v1052_v52  ;;  %2753 = vmatprep.subr.bf16.mxu0 %v3380_v16 }
 0x168   : > { %2731 = vmatprep.mubr.msk.bf16.mxu1 %vm3382_vm1, %v3380_v16 }
 0x1d2   : > { %v1012_v29 = vpop.xlane.xlu0 %1011 }
 0x1d3   : > { %v1015_v30 = vmul.f32 0.03125, %v1012_v29 }
 0x1d5   : > { %v1017_v32 = vsub.f32 %v3814_v14, %v1015_v30  ;;  %v1186_v14 = vrot.slane %v1181_v13, %v1185_v12 }
 0x1d6   : > { %v1014_v33 = vpop.xlane.xlu0 %1013 }
 0x1d7   : > { %v1016_v34 = vmul.f32 0.03125, %v1014_v33  ;;  %v1019_v35 = vmul.f32 %v3838_v31, %v1017_v32 }
 0x1d9   : > { %v1018_v36 = vsub.f32 %v3817_v15, %v1016_v34  ;;  %v1021_v37 = vmul.f32 %v1019_v35, %v1019_v35 }
 0x1db   : > { %1023 = vadd.xlane.f32.xlu1 %v1021_v37  ;;  %v1020_v38 = vmul.f32 %v3838_v31, %v1018_v36 }
 0x1dd   : > { %v1022_v39 = vmul.f32 %v1020_v38, %v1020_v38 }
 0x1df   : > { %1025 = vadd.xlane.f32.xlu1 %v1022_v39 }
 0x227   : > { %v1307_v15 = vpop.f32.mrf.mxu1 }
 0x228   : > { %v1308_v17 = vadd.f32 %v1307_v15, %v1186_v14 }
 0x229   : > { %v1309_v20 = vpop.f32.mrf.mxu1 }
 0x22a   : > { %v3895_v18 = vpack.c.bf16 %v1308_v17, %v1308_v17  ;;  %v1310_v34 = vadd.f32 %v1309_v20, %v3906_v26 }
 0x22b   : > { %v1311_v21 = vpop.f32.mrf.mxu1 }
 0x22c   : > { %v1331_v19 = vsel %vm1326_vm2, %v3895_v18, 0  ;;  %v1312_v23 = vadd.f32 %v1311_v21, %v1186_v14 }
 0x22d   : > { %2730 = vmatpush3.bf16.xpose.msra.mxu1 %v1331_v19  ;;  %v1313_v41 = vpop.f32.mrf.mxu1 }
 0x22e   : > { %2735 = vmatprep.subr.bf16.mxu1 %v3380_v16  ;;  %v1325_v27 = vpack.c.bf16 %v1312_v23, %v1312_v23 }
 0x264   : > { %v1024_v56 = vpop.xlane.xlu1 %1023 }
 0x265   : > { %v1027_v57 = vmul.f32 0.03125, %v1024_v56 }
 0x267   : > { %v1029_v58 = vadd.f32 1e-08, %v1027_v57 }
 0x268   : > { %v1026_v59 = vpop.xlane.xlu1 %1025 }
 0x269   : > { %3041 = vrsqrt.f32 %v1029_v58  ;;  %v1028_v60 = vmul.f32 0.03125, %v1026_v59 }
 0x26b   : > { %v1030_v61 = vadd.f32 1e-08, %v1028_v60 }
 0x26d   : > { %3043 = vrsqrt.f32 %v1030_v61 }
 0x276   : > { %v3042_v62 = vpop.eup %3041 }
 0x277   : > { %v1033_v63 = vmul.f32 %v3042_v62, %v1019_v35  ;;  %v1377_v35 = vsel %vm1326_vm2, %v1325_v27, 0 }
 0x279   : > { %v1041_v5 = vmul.f32 %v2578_v2, %v1033_v63 }
 0x27a   : > { %v3044_v3 = vpop.eup %3043 }
 0x27b   : > { %v1034_v4 = vmul.f32 %v3044_v3, %v1020_v38  ;;  %v3882_v8 = vadd.f32 %v2579_v6, %v1041_v5  ;;  %v3914_v38 = vpack.c.bf16 %v1310_v34, %v1310_v34 }
 0x27d   : > { %v1042_v7 = vmul.f32 %v2578_v2, %v1034_v4  ;;  %v1455_v40 = vsel %vm1453_vm3, %v3914_v38, 0 }
 0x27f   : > { %v3884_v9 = vadd.f32 %v2579_v6, %v1042_v7  ;;  %v1314_v7 = vadd.f32 %v1313_v41, %v3906_v26 }
 0x281   : > { %v1051_v10 = vpack.c.bf16 %v3884_v9, %v3882_v8  ;;  %v1449_v13 = vpack.c.bf16 %v1314_v7, %v1314_v7  ;;  %v3021_v7 = vld [vmem:[%s3736_s9 + $0x18] sm:$0xff]  }
 0x283   : > { %2726 = vmatmul.mubr.bf16.vlgmr.msra.gmra.mxu0 %v1051_v10  ;;  %v1501_v17 = vsel %vm1453_vm3, %v1449_v13, 0 }
 0x284   : > { %2755 = vmatprep.mubr.msk.bf16.mxu0 %vm3382_vm1, %v3380_v16 }
 0x343   : > { %v1158_v25 = vpop.f32.mrf.mxu0 }
 0x344   : > { %v1159_v29 = vadd.f32 %v2580_v24, %v1158_v25 }
 0x345   : > { %v2727_v30 = vpop.f32.mrf.mxu0 }
 0x346   : > { %v1322_v32 = vpack.c.bf16 %v1159_v29, %v1159_v29 }
 0x347   : > { %v1161_v33 = vpop.f32.mrf.mxu0 }
 0x348   : > { %2732 = vmatmul.mubr.msk.bf16.vlgmr.msra.gmra.mxu1 %vm1326_vm2, %v1322_v32  ;;  %v1162_v37 = vadd.f32 %v2580_v24, %v1161_v33 }
 0x349   : > { %2736 = vmatpush3.bf16.xpose.msra.mxu1 %v1377_v35  ;;  %v2728_v36 = vpop.f32.mrf.mxu0  ;;  %2737 = vmatprep.mubr.msk.bf16.mxu1 %vm3382_vm1, %v3380_v16 }
 0x34a   : > { %2741 = vmatprep.subr.bf16.mxu1 %v3380_v16  ;;  %v1323_v39 = vpack.c.bf16 %v1162_v37, %v1162_v37 }
 0x350   : > { %2738 = vmatmul.mubr.msk.bf16.vlgmr.msra.gmra.mxu1 %vm1326_vm2, %v1323_v39 }
 0x351   : > { %2742 = vmatpush3.bf16.msra.mxu1 %v1455_v40  ;;  %2743 = vmatprep.mubr.msk.bf16.mxu1 %vm3382_vm1, %v3380_v16 }
 0x352   : > { %2747 = vmatprep.subr.bf16.mxu1 %v3380_v16 }
 0x408   : > { %v1367_v42 = vpop.f32.mrf.mxu1 }
 0x409   : > { %v1421_v43 = vsel %vm1318_vm4, %v1367_v42, -1e+30 }
 0x40a   : > { %v2733_v44 = vpop.f32.mrf.mxu1  ;;  %v1424_v45 = vsel %vm1423_vm5, %v1421_v43, -inf }
 0x40b   : > { %1425 = vmax.xlane.f32.xlu0 %v1424_v45 }
 0x40c   : > { %v1370_v46 = vpop.f32.mrf.mxu1 }
 0x40e   : > { %v2734_v47 = vpop.f32.mrf.mxu1 }
 0x410   : > { %v1413_v48 = vpop.f32.mrf.mxu1 }
 0x411   : > { %v1422_v49 = vsel %vm1318_vm4, %v1413_v48, -1e+30 }
 0x412   : > { %v2739_v50 = vpop.f32.mrf.mxu1  ;;  %v1427_v51 = vsel %vm1423_vm5, %v1422_v49, -inf }
 0x413   : > { %1428 = vmax.xlane.f32.xlu1 %v1427_v51 }
 0x414   : > { %v1416_v52 = vpop.f32.mrf.mxu1 }
 0x416   : > { %v2740_v53 = vpop.f32.mrf.mxu1 }
 0x424   : > { %1601 = vrot.lane.b32.xlu1 %v1325_v27, %s3383_s12 }
 0x494   : > { %v1426_v54 = vpop.xlane.xlu0 %1425 }
 0x495   : > { %v1430_v55 = vsub.f32 %v1421_v43, %v1426_v54 }
 0x497   : > { %v1432_v56 = vmul.f32 1.442695, %v1430_v55 }
 0x499   : > { %3045 = vpow2.f32 %v1432_v56 }
 0x49c   : > { %v1429_v57 = vpop.xlane.xlu1 %1428 }
 0x49d   : > { %v1431_v58 = vsub.f32 %v1422_v49, %v1429_v57 }
 0x49f   : > { %v1434_v59 = vmul.f32 1.442695, %v1431_v58 }
 0x4a0   : > { %v1602_v3 = vpop.permute.xlu1 %1601 }
 0x4a1   : > { %3047 = vpow2.f32 %v1434_v59  ;;  %v1607_v21 = vsel %vm1326_vm2, %v1602_v3, 0  ;;  %v3017_v3 = vld [vmem:[%s3736_s9 + $0x38] sm:$0xff]  }
 0x4a6   : > { %v3046_v60 = vpop.eup %3045 }
 0x4a7   : > { %v1436_v61 = vsel %vm1423_vm5, %v3046_v60, 0.0 }
 0x4a8   : > { %1437 = vadd.xlane.f32.xlu0 %v1436_v61 }
 0x4ae   : > { %v3048_v62 = vpop.eup %3047 }
 0x4af   : > { %v1439_v63 = vsel %vm1423_vm5, %v3048_v62, 0.0 }
 0x4b0   : > { %1440 = vadd.xlane.f32.xlu1 %v1439_v63 }
 0x4be   : > { %1549 = vrot.lane.b32.xlu0 %v3895_v18, %s3383_s12 }
 0x4c1   : > { %1546 = vrot.lane.b32.xlu1 %v1322_v32, %s3383_s12 }
 0x4c5   : > { %1598 = vrot.lane.b32.xlu1 %v1323_v39, %s3383_s12 }
 0x531   : > { %v1438_v2 = vpop.xlane.xlu0 %1437 }
 0x532   : > { %3049 = vrcp.f32 %v1438_v2 }
 0x535   : > { %v1550_v4 = vpop.permute.xlu0 %1549 }
 0x536   : > { %v1555_v5 = vsel %vm1326_vm2, %v1550_v4, 0  ;;  %v3018_v4 = vld [vmem:[%s3736_s9 + $0x30] sm:$0xff]  }
 0x537   : > { %2754 = vmatpush3.bf16.xpose.msra.mxu0 %v1555_v5  ;;  %v3019_v5 = vld [vmem:[%s3736_s9 + $0x28] sm:$0xff]  }
 0x538   : > { %2765 = vmatprep.subr.bf16.mxu0 %v3380_v16 }
 0x539   : > { %v1441_v6 = vpop.xlane.xlu1 %1440 }
 0x53a   : > { %3051 = vrcp.f32 %v1441_v6  ;;  %v3020_v6 = vld [vmem:[%s3736_s9 + $0x20] sm:$0xff]  }
 0x53d   : > { %v1547_v10 = vpop.permute.xlu1 %1546 }
 0x53e   : > { %2756 = vmatmul.mubr.msk.bf16.vlgmr.msra.gmra.mxu0 %vm1326_vm2, %v1547_v10  ;;  %v3022_v10 = vld [vmem:[%s3736_s9 + $0x10] sm:$0xff]  }
 0x53f   : > { %v3050_v12 = vpop.eup %3049  ;;  %2767 = vmatprep.mubr.msk.bf16.mxu0 %vm3382_vm1, %v3380_v16 }
 0x540   : > { %v1444_v14 = vmul.f32 %v3050_v12, %v3046_v60  ;;  %v3023_v12 = vld [vmem:[%s3736_s9 + $0x8] sm:$0xff]  }
 0x541   : > { %v1599_v22 = vpop.permute.xlu1 %1598 }
 0x542   : > { %v1446_v15 = vpack.c.bf16 %v1444_v14, %v1444_v14 }
 0x544   : > { %2744 = vmatmul.mubr.msk.bf16.vlgmr.msra.gmra.mxu1 %vm1423_vm5, %v1446_v15  ;;  %v3024_v15 = vld [vmem:[%s3736_s9] sm:$0xff]  }
 0x545   : > { %2748 = vmatpush3.bf16.msra.mxu1 %v1501_v17  ;;  %2749 = vmatprep.mubr.msk.bf16.mxu1 %vm3382_vm1, %v3380_v16 }
 0x546   : > { %2759 = vmatprep.subr.bf16.mxu1 %v3380_v16 }
 0x547   : > { %v3052_v18 = vpop.eup %3051 }
 0x548   : > { %v1445_v19 = vmul.f32 %v3052_v18, %v3048_v62 }
 0x54a   : > { %v1447_v20 = vpack.c.bf16 %v1445_v19, %v1445_v19 }
 0x54c   : > { %2750 = vmatmul.mubr.msk.bf16.vlgmr.msra.gmra.mxu1 %vm1423_vm5, %v1447_v20 }
 0x54d   : > { %2760 = vmatpush3.bf16.xpose.msra.mxu1 %v1607_v21  ;;  %2761 = vmatprep.mubr.msk.bf16.mxu1 %vm3382_vm1, %v3380_v16 }
 0x54e   : > { %2771 = vmatprep.subr.bf16.mxu1 %v3380_v16 }
 0x554   : > { %2762 = vmatmul.mubr.msk.bf16.vlgmr.msra.gmra.mxu1 %vm1326_vm2, %v1599_v22 }
 0x555   : > { %2773 = vmatprep.mubr.msk.bf16.mxu1 %vm3382_vm1, %v3380_v16 }
 0x5fe   : > { %v1591_v23 = vpop.f32.mrf.mxu0 }
 0x5ff   : > { %v1649_v24 = vsel %vm1318_vm4, %v1591_v23, -1e+30 }
 0x600   : > { %v2757_v25 = vpop.f32.mrf.mxu0  ;;  %v1651_v26 = vsel %vm1423_vm5, %v1649_v24, -inf }
 0x601   : > { %1652 = vmax.xlane.f32.xlu0 %v1651_v26 }
 0x602   : > { %v1594_v27 = vpop.f32.mrf.mxu0 }
 0x604   : > { %v1491_v29 = vpop.f32.mrf.mxu1  ;;  %v2758_v30 = vpop.f32.mrf.mxu0 }
 0x605   : > { %1543 = vst.msk [vmem:[#allocation2] sm:$0xff] %vm1326_vm2, %v1491_v29  ;;  %v2613_v29 = vld [vmem:[%s960_s19] ss:$0 sm:$0xff] }
 0x606   : > { %v2745_v32 = vpop.f32.mrf.mxu1 }
 0x608   : > { %v1494_v33 = vpop.f32.mrf.mxu1 }
 0x60a   : > { %v2746_v34 = vpop.f32.mrf.mxu1 }
 0x60c   : > { %v1537_v35 = vpop.f32.mrf.mxu1 }
 0x60d   : > { %1544 = vst.msk [vmem:[#allocation2 + $0x8] sm:$0xff] %vm1326_vm2, %v1537_v35 }
 0x60e   : > { %v2751_v36 = vpop.f32.mrf.mxu1 }
 0x610   : > { %v1540_v37 = vpop.f32.mrf.mxu1 }
 0x612   : > { %v2752_v39 = vpop.f32.mrf.mxu1 }
 0x614   : > { %v1643_v40 = vpop.f32.mrf.mxu1 }
 0x615   : > { %v1650_v41 = vsel %vm1318_vm4, %v1643_v40, -1e+30  ;;  %v3025_v40 = vld [vmem:[%s3742_s4 + $0x38] sm:$0xff]  }
 0x616   : > { %v2763_v42 = vpop.f32.mrf.mxu1  ;;  %v1654_v43 = vsel %vm1423_vm5, %v1650_v41, -inf }
 0x617   : > { %1655 = vmax.xlane.f32.xlu1 %v1654_v43 }
 0x618   : > { %v1646_v44 = vpop.f32.mrf.mxu1 }
 0x61a   : > { %v2764_v45 = vpop.f32.mrf.mxu1 }
 0x628   : > { %1725 = vrot.lane.b32.xlu1 %v1449_v13, %s3383_s12 }
 0x68a   : > { %v1653_v46 = vpop.xlane.xlu0 %1652 }
 0x68b   : > { %v1657_v47 = vsub.f32 %v1649_v24, %v1653_v46 }
 0x68d   : > { %v1659_v48 = vmul.f32 1.442695, %v1657_v47 }
 0x68f   : > { %3053 = vpow2.f32 %v1659_v48  ;;  %v3026_v48 = vld [vmem:[%s3742_s4 + $0x30] sm:$0xff]  }
 0x69c   : > { %v3054_v49 = vpop.eup %3053 }
 0x69d   : > { %v1663_v50 = vsel %vm1423_vm5, %v3054_v49, 0.0 }
 0x69e   : > { %1664 = vadd.xlane.f32.xlu0 %v1663_v50  ;;  %v3028_v50 = vld [vmem:[%s3742_s4 + $0x20] sm:$0xff]  }
 0x6a0   : > { %v1656_v51 = vpop.xlane.xlu1 %1655 }
 0x6a1   : > { %v1658_v52 = vsub.f32 %v1650_v41, %v1656_v51  ;;  %v3029_v51 = vld [vmem:[%s3742_s4 + $0x18] sm:$0xff]  }
 0x6a3   : > { %v1661_v28 = vmul.f32 1.442695, %v1658_v52  ;;  %v3030_v52 = vld [vmem:[%s3742_s4 + $0x10] sm:$0xff]  }
 0x6a4   : > { %v1726_v11 = vpop.permute.xlu1 %1725 }
 0x6a5   : > { %3055 = vpow2.f32 %v1661_v28  ;;  %v1731_v53 = vsel %vm1453_vm3, %v1726_v11, 0  ;;  %v3031_v28 = vld [vmem:[%s3742_s4 + $0x8] sm:$0xff]   ;;  %v3032_v11 = vld [vmem:[%s3742_s4] sm:$0xff]  }
 0x6a6   : > { %2772 = vmatpush3.bf16.msra.mxu1 %v1731_v53  ;;  %v3033_v53 = vld [vmem:[%s3744_s29 + $0x38] sm:$0xff]  }
 0x6a7   : > { %2797 = vmatprep.subr.bf16.mxu1 %v3380_v16 }
 0x6b2   : > { %v3056_v54 = vpop.eup %3055 }
 0x6b3   : > { %v1666_v55 = vsel %vm1423_vm5, %v3056_v54, 0.0 }
 0x6b4   : > { %1667 = vadd.xlane.f32.xlu0 %v1666_v55  ;;  %v3036_v55 = vld [vmem:[%s3744_s29 + $0x20] sm:$0xff]  }
 0x6ca   : > { %1676 = vrot.lane.b32.xlu0 %v3914_v38, %s3383_s12 }
 0x727   : > { %v1665_v56 = vpop.xlane.xlu0 %1664 }
 0x728   : > { %3057 = vrcp.f32 %v1665_v56  ;;  %v3037_v56 = vld [vmem:[%s3744_s29 + $0x18] sm:$0xff]  }
 0x735   : > { %v3058_v57 = vpop.eup %3057 }
 0x736   : > { %v1671_v59 = vmul.f32 %v3058_v57, %v3054_v49  ;;  %v3027_v49 = vld [vmem:[%s3742_s4 + $0x28] sm:$0xff]  }
 0x738   : > { %v1673_v62 = vpack.c.bf16 %v1671_v59, %v1671_v59 }
 0x73d   : > { %v1668_v58 = vpop.xlane.xlu0 %1667 }
 0x73e   : > { %3059 = vrcp.f32 %v1668_v58 }
 0x741   : > { %v1677_v60 = vpop.permute.xlu0 %1676 }
 0x742   : > { %v1682_v61 = vsel %vm1453_vm3, %v1677_v60, 0 }
 0x743   : > { %2766 = vmatpush3.bf16.msra.mxu0 %v1682_v61 }
 0x744   : > { %2777 = vmatprep.subr.bf16.mxu0 %v3380_v16 }
 0x746   : > { %2768 = vmatmul.mubr.msk.bf16.vlgmr.msra.gmra.mxu0 %vm1423_vm5, %v1673_v62 }
 0x747   : > { %2793 = vmatprep.mubr.msk.bf16.mxu0 %vm3382_vm1, %v3380_v16  ;;  %2778 = vmatpush3.bf16.msra.mxu0 %v3017_v3 }
 0x748   : > { %2779 = vmatprep.subr.bf16.mxu0 %v3380_v16 }
 0x74b   : > { %v3060_v38 = vpop.eup %3059  ;;  %2780 = vmatpush3.bf16.msra.mxu0 %v3018_v4 }
 0x74c   : > { %v1672_v63 = vmul.f32 %v3060_v38, %v3056_v54  ;;  %2781 = vmatprep.subr.bf16.mxu0 %v3380_v16  ;;  %v3034_v54 = vld [vmem:[%s3744_s29 + $0x30] sm:$0xff]  }
 0x74e   : > { %v1674_v2 = vpack.c.bf16 %v1672_v63, %v1672_v63 }
 0x74f   : > { %2782 = vmatpush3.bf16.msra.mxu0 %v3019_v5 }
 0x750   : > { %2774 = vmatmul.mubr.msk.bf16.vlgmr.msra.gmra.mxu1 %vm1423_vm5, %v1674_v2  ;;  %2783 = vmatprep.subr.bf16.mxu0 %v3380_v16  ;;  %v2622_v2 = vld [vmem:[%s963_s6] ss:$0 sm:$0xff] }
 0x751   : > { %2813 = vmatprep.mubr.msk.bf16.mxu1 %vm3382_vm1, %v3380_v16  ;;  %2798 = vmatpush3.bf16.msra.mxu1 %v3025_v40 }
 0x752   : > { %2799 = vmatprep.subr.bf16.mxu1 %v3380_v16 }
 0x753   : > { %2784 = vmatpush3.bf16.msra.mxu0 %v3020_v6  ;;  %v2623_v6 = vld [vmem:[%s966_s11] ss:$0 sm:$0xff] }
 0x754   : > { %2785 = vmatprep.subr.bf16.mxu0 %v3380_v16 }
 0x755   : > { %2800 = vmatpush3.bf16.msra.mxu1 %v3026_v48 }
 0x756   : > { %2801 = vmatprep.subr.bf16.mxu1 %v3380_v16 }
 0x757   : > { %2786 = vmatpush3.bf16.msra.mxu0 %v3021_v7 }
 0x758   : > { %2787 = vmatprep.subr.bf16.mxu0 %v3380_v16 }
 0x759   : > { %2802 = vmatpush3.bf16.msra.mxu1 %v3027_v49 }
 0x75a   : > { %2803 = vmatprep.subr.bf16.mxu1 %v3380_v16 }
 0x75b   : > { %2788 = vmatpush3.bf16.msra.mxu0 %v3022_v10 }
 0x75c   : > { %2789 = vmatprep.subr.bf16.mxu0 %v3380_v16 }
 0x75d   : > { %2804 = vmatpush3.bf16.msra.mxu1 %v3028_v50 }
 0x75e   : > { %2805 = vmatprep.subr.bf16.mxu1 %v3380_v16 }
 0x75f   : > { %2790 = vmatpush3.bf16.msra.mxu0 %v3023_v12 }
 0x760   : > { %2791 = vmatprep.subr.bf16.mxu0 %v3380_v16 }
 0x761   : > { %2806 = vmatpush3.bf16.msra.mxu1 %v3029_v51 }
 0x762   : > { %2807 = vmatprep.subr.bf16.mxu1 %v3380_v16 }
 0x763   : > { %2792 = vmatpush3.bf16.msra.mxu0 %v3024_v15  ;;  %v3039_v15 = vld [vmem:[%s3744_s29 + $0x8] sm:$0xff]  }
 0x764   : > { %2817 = vmatprep.subr.bf16.mxu0 %v3380_v16 }
 0x765   : > { %2808 = vmatpush3.bf16.msra.mxu1 %v3030_v52 }
 0x766   : > { %2809 = vmatprep.subr.bf16.mxu1 %v3380_v16 }
 0x769   : > { %2810 = vmatpush3.bf16.msra.mxu1 %v3031_v28 }
 0x76a   : > { %2811 = vmatprep.subr.bf16.mxu1 %v3380_v16 }
 0x76d   : > { %2812 = vmatpush3.bf16.msra.mxu1 %v3032_v11 }
 0x806   : > { %v1718_v13 = vpop.f32.mrf.mxu0 }
 0x807   : > { %1775 = vrot.lane.b32.xlu1 %v1718_v13, %s3384_s16 }
 0x808   : > { %v2769_v14 = vpop.f32.mrf.mxu0 }
 0x809   : > { %v3038_v14 = vld [vmem:[%s3744_s29 + $0x10] sm:$0xff]  }
 0x80a   : > { %v1721_v17 = vpop.f32.mrf.mxu0 }
 0x80b   : > { %v3040_v17 = vld [vmem:[%s3744_s29] sm:$0xff]  }
 0x80c   : > { %v2770_v18 = vpop.f32.mrf.mxu0 }
 0x80d   : > { %v2624_v18 = vld [vmem:[%s969_s26] ss:$0 sm:$0xff] }
 0x810   : > { %v1767_v19 = vpop.f32.mrf.mxu1 }
 0x811   : > { %1777 = vrot.lane.b32.xlu1 %v1767_v19, %s3384_s16 }
 0x812   : > { %v2775_v20 = vpop.f32.mrf.mxu1 }
 0x814   : > { %v1770_v21 = vpop.f32.mrf.mxu1 }
 0x816   : > { %v2776_v22 = vpop.f32.mrf.mxu1 }
 0x879   : > { %v1776_v23 = vpop.permute.xlu1 %1775 }
 0x87a   : > { %1782 = vst.msk [vmem:[#allocation2] sm:$0xff] %vm1781_vm7, %v1776_v23 }
 0x881   : > { %v1784_v25 = vld [vmem:[#allocation2] sm:$0xff] }
 0x883   : > { %v1778_v24 = vpop.permute.xlu1 %1777 }
 0x884   : > { %1783 = vst.msk [vmem:[#allocation2 + $0x8] sm:$0xff] %vm1781_vm7, %v1778_v24 }
 0x88b   : > { %v1785_v26 = vld [vmem:[#allocation2 + $0x8] sm:$0xff] }
 0x88c   : > { %v1786_v27 = vpack.c.bf16 %v1785_v26, %v1784_v25 }
 0x88e   : > { %2794 = vmatmul.mubr.bf16.vlgmr.msra.gmra.mxu0 %v1786_v27 }
 0x88f   : > { %2833 = vmatprep.mubr.msk.bf16.mxu0 %vm3382_vm1, %v3380_v16  ;;  %2818 = vmatpush3.bf16.msra.mxu0 %v3033_v53 }
 0x890   : > { %2819 = vmatprep.subr.bf16.mxu0 %v3380_v16 }
 0x893   : > { %2820 = vmatpush3.bf16.msra.mxu0 %v3034_v54 }
 0x894   : > { %2821 = vmatprep.subr.bf16.mxu0 %v3380_v16 }
 0x94e   : > { %v1892_v30 = vpop.f32.mrf.mxu0 }
 0x94f   : > { %v1893_v32 = vadd.f32 %v2613_v29, %v1892_v30 }
 0x950   : > { %v2795_v33 = vpop.f32.mrf.mxu0 }
 0x951   : > { %v1899_v34 = vadd.f32 %v1893_v32, %v3882_v8 }
 0x952   : > { %v1895_v35 = vpop.f32.mrf.mxu0 }
 0x953   : > { %v1896_v36 = vadd.f32 %v2613_v29, %v1895_v35  ;;  %1903 = vadd.xlane.f32.xlu0 %v1899_v34 }
 0x954   : > { %v2796_v37 = vpop.f32.mrf.mxu0 }
 0x955   : > { %v1900_v39 = vadd.f32 %v1896_v36, %v3884_v9 }
 0x957   : > { %1905 = vadd.xlane.f32.xlu1 %v1900_v39 }
 0x968   : > { %2180 = vperm.xlu1 %2984, %v3766_v1  }
 0x9dc   : > { %v1904_v41 = vpop.xlane.xlu0 %1903 }
 0x9dd   : > { %v1907_v42 = vmul.f32 0.03125, %v1904_v41 }
 0x9df   : > { %v1909_v43 = vsub.f32 %v1899_v34, %v1907_v42 }
 0x9e0   : > { %v1906_v8 = vpop.xlane.xlu1 %1905 }
 0x9e1   : > { %v1908_v44 = vmul.f32 0.03125, %v1906_v8  ;;  %v1911_v45 = vmul.f32 %v3838_v31, %v1909_v43 }
 0x9e3   : > { %v1910_v46 = vsub.f32 %v1900_v39, %v1908_v44  ;;  %v1913_v9 = vmul.f32 %v1911_v45, %v1911_v45 }
 0x9e4   : > { %v2181_v40 = vpop.permute.xlu1 %2180 }
 0x9e5   : > { %1915 = vadd.xlane.f32.xlu0 %v1913_v9  ;;  %v1912_v1 = vmul.f32 %v3838_v31, %v1910_v46 }
 0x9e7   : > { %v1914_v47 = vmul.f32 %v1912_v1, %v1912_v1 }
 0x9e9   : > { %1917 = vadd.xlane.f32.xlu0 %v1914_v47 }
 0x9ff   : > { %2175 = vperm.xlu0 %2983, %v3764_v0   ;;  %v3035_v0 = vld [vmem:[%s3744_s29 + $0x28] sm:$0xff]   ;;  %s4272_s29 = sld [smem:[#allocation25_spill]] }
 0xa00   : > { %2822 = vmatpush3.bf16.msra.mxu0 %v3035_v0 }
 0xa01   : > { %2823 = vmatprep.subr.bf16.mxu0 %v3380_v16 }
 0xa04   : > { %2824 = vmatpush3.bf16.msra.mxu0 %v3036_v55 }
 0xa05   : > { %2825 = vmatprep.subr.bf16.mxu0 %v3380_v16  ;;  %p2642_p5 = scmp.ne.s32.totalorder %s4272_s29, 1 }
 0xa06   : > { %s4274_s24 = sld [smem:[#allocation54_spill]] (!%p2642_p5) }
 0xa08   : > { %2826 = vmatpush3.bf16.msra.mxu0 %v3037_v56 }
 0xa09   : > { %2827 = vmatprep.subr.bf16.mxu0 %v3380_v16 }
 0xa0c   : > { %2828 = vmatpush3.bf16.msra.mxu0 %v3038_v14 }
 0xa0d   : > { %2829 = vmatprep.subr.bf16.mxu0 %v3380_v16 }
 0xa10   : > { %2830 = vmatpush3.bf16.msra.mxu0 %v3039_v15 }
 0xa11   : > { %2831 = vmatprep.subr.bf16.mxu0 %v3380_v16  ;;  %v2633_v16 = vld [vmem:[%s972_s5] ss:$0 sm:$0xff]  ;;  %s4273_s5 = sld [smem:[#allocation53_spill]] (!%p2642_p5) }
 0xa14   : > { %2832 = vmatpush3.bf16.msra.mxu0 %v3040_v17 }
 0xa6e   : > { %v1916_v57 = vpop.xlane.xlu0 %1915 }
 0xa6f   : > { %v1919_v58 = vmul.f32 0.03125, %v1916_v57 }
 0xa71   : > { %v1921_v59 = vadd.f32 1e-08, %v1919_v58 }
 0xa72   : > { %v1918_v60 = vpop.xlane.xlu0 %1917 }
 0xa73   : > { %3061 = vrsqrt.f32 %v1921_v59  ;;  %v1920_v61 = vmul.f32 0.03125, %v1918_v60 }
 0xa75   : > { %v1922_v62 = vadd.f32 1e-08, %v1920_v61 }
 0xa77   : > { %3063 = vrsqrt.f32 %v1922_v62 }
 0xa7a   : > { %v2176_v33 = vpop.permute.xlu0 %2175 }
 0xa80   : > { %v3062_v38 = vpop.eup %3061 }
 0xa81   : > { %v1925_v63 = vmul.f32 %v3062_v38, %v1911_v45 }
 0xa83   : > { %v1933_v5 = vmul.f32 %v2622_v2, %v1925_v63 }
 0xa84   : > { %v3064_v3 = vpop.eup %3063 }
 0xa85   : > { %v1926_v4 = vmul.f32 %v3064_v3, %v1912_v1  ;;  %v1941_v10 = vadd.f32 %v2623_v6, %v1933_v5 }
 0xa87   : > { %v1934_v7 = vmul.f32 %v2622_v2, %v1926_v4 }
 0xa89   : > { %v1942_v12 = vadd.f32 %v2623_v6, %v1934_v7 }
 0xa8b   : > { %v1943_v13 = vpack.c.bf16 %v1942_v12, %v1941_v10 }
 0xa8d   : > { %2814 = vmatmul.mubr.bf16.vlgmr.msra.gmra.mxu1 %v1943_v13 }
 0xb4d   : > { %v2049_v19 = vpop.f32.mrf.mxu1 }
 0xb4e   : > { %v2050_v21 = vadd.f32 %v2624_v18, %v2049_v19 }
 0xb4f   : > { %v2815_v20 = vpop.f32.mrf.mxu1 }
 0xb50   : > { %v2056_v25 = vmax.f32 %v2050_v21, 0.0 }
 0xb51   : > { %v2052_v22 = vpop.f32.mrf.mxu1 }
 0xb52   : > { %v2053_v23 = vadd.f32 %v2624_v18, %v2052_v22 }
 0xb53   : > { %v2816_v24 = vpop.f32.mrf.mxu1 }
 0xb54   : > { %v2057_v26 = vmax.f32 %v2053_v23, 0.0 }
 0xb56   : > { %v2058_v27 = vpack.c.bf16 %v2057_v26, %v2056_v25 }
 0xb58   : > { %2834 = vmatmul.mubr.bf16.vlgmr.msra.gmra.mxu0 %v2058_v27 }
 0xc18   : > { %v2164_v29 = vpop.f32.mrf.mxu0 }
 0xc19   : > { %v2165_v30 = vadd.f32 %v2633_v16, %v2164_v29 }
 0xc1a   : > { %v2835_v32 = vpop.f32.mrf.mxu0 }
 0xc1b   : > { %v2171_v34 = vadd.f32 %v2165_v30, %v1941_v10 }
 0xc1c   : > { %v2167_v35 = vpop.f32.mrf.mxu0 }
 0xc1d   : > { %v2183_v36 = vmul.f32 %v2176_v33, %v2171_v34  ;;  %v2168_v37 = vadd.f32 %v2633_v16, %v2167_v35  ;;  %2188 = sbr.rel (%p2642_p5) target bundleno = 3419 (0xd5b), region = 128 }
 0xc1e   : > { %v2836_v39 = vpop.f32.mrf.mxu0 }
 0xc1f   : > { %v2172_v41 = vadd.f32 %v2168_v37, %v1942_v12 }
 0xc21   : > { %v2184_v42 = vmul.f32 %v2181_v40, %v2172_v41 }
 0xc22   : > { %2191 = vadd.xlane.f32.xlu0 %v2183_v36  ;;  %v2643_v0 = vld [vmem:[%s4273_s5] ss:$0 sm:$0xff] }
 0xc26   : > { %2193 = vadd.xlane.f32.xlu0 %v2184_v42 }
 0xcab   : > { %v2192_v43 = vpop.xlane.xlu0 %2191 }
 0xcac   : > { %v2195_v8 = vmul.f32 0.03125, %v2192_v43 }
 0xcae   : > { %v2197_v44 = vsub.f32 %v2183_v36, %v2195_v8 }
 0xcaf   : > { %v2194_v45 = vpop.xlane.xlu0 %2193 }
 0xcb0   : > { %v2199_v46 = vmul.f32 %v3838_v31, %v2197_v44  ;;  %v2196_v9 = vmul.f32 0.03125, %v2194_v45 }
 0xcb2   : > { %v2198_v1 = vsub.f32 %v2184_v42, %v2196_v9  ;;  %v2201_v47 = vmul.f32 %v2199_v46, %v2199_v46 }
 0xcb4   : > { %v2200_v48 = vmul.f32 %v3838_v31, %v2198_v1  ;;  %2203 = vadd.xlane.f32.xlu1 %v2201_v47  ;;  %v2644_v31 = vld [vmem:[%s4274_s24] ss:$0 sm:$0xff] }
 0xcb6   : > { %v2202_v49 = vmul.f32 %v2200_v48, %v2200_v48 }
 0xcb8   : > { %2205 = vadd.xlane.f32.xlu1 %v2202_v49 }
 0xd3d   : > { %v2204_v50 = vpop.xlane.xlu1 %2203 }
 0xd3e   : > { %v2207_v51 = vmul.f32 0.03125, %v2204_v50 }
 0xd40   : > { %v2209_v52 = vadd.f32 1e-08, %v2207_v51 }
 0xd41   : > { %v2206_v28 = vpop.xlane.xlu1 %2205 }
 0xd42   : > { %3065 = vrsqrt.f32 %v2209_v52  ;;  %v2208_v11 = vmul.f32 0.03125, %v2206_v28 }
 0xd44   : > { %v2210_v53 = vadd.f32 1e-08, %v2208_v11 }
 0xd46   : > { %3067 = vrsqrt.f32 %v2210_v53 }
 0xd4f   : > { %v3066_v54 = vpop.eup %3065 }
 0xd50   : > { %v2213_v55 = vmul.f32 %v3066_v54, %v2199_v46 }
 0xd52   : > { %v2221_v56 = vmul.f32 %v2643_v0, %v2213_v55 }
 0xd53   : > { %v3068_v57 = vpop.eup %3067 }
 0xd54   : > { %v2229_v58 = vadd.f32 %v2644_v31, %v2221_v56  ;;  %v2214_v59 = vmul.f32 %v3068_v57, %v2200_v48 }
 0xd56   : > { %2231 = vst [vmem:[%s3806_s15] sm:$0xff] %v2229_v58  ;;  %v2222_v60 = vmul.f32 %v2643_v0, %v2214_v59 }
 0xd58   : > { %v2230_v61 = vadd.f32 %v2644_v31, %v2222_v60 }
 0xd5a   : > { %2232 = vst [vmem:[%s3806_s15 + $0x8] sm:$0xff] %v2230_v61 }
 0xd5b PF: > { %s4275_s21 = sld [smem:[#allocation25_spill]] }
 0xd61   : > { %p2645_p12 = scmp.eq.s32.totalorder %s4275_s21, 1 }
 0xd63   : > { %2236 = sbr.rel (%p2645_p12) target bundleno = 3433 (0xd69), region = 132 }
 0xd68   : > { %2237 = vst [vmem:[%s3806_s15] sm:$0xff] %v2183_v36  ;;  %2238 = vst [vmem:[%s3806_s15 + $0x8] sm:$0xff] %v2184_v42 }
 0xd69 PF: > { %s4276_s17 = sld [smem:[#allocation26_spill]]  ;;  %s2253_s1 = sshll.u32 %s3806_s15, 4  ;;  %s4085_s1 = int_to_ptr.vmem [resolvable:$true] %s2253_s1 }
 0xd6a   : > { %s4277_s18 = sld [smem:[#allocation21_spill]]  ;;  %s3235_s4 = scalar_lea.vmem %s4085_s1, 256 }
 0xd6b   : > { %s4278_s8 = sld [smem:[#allocation33_spill]]  ;;  %p3236_p10 = scmp.ne.s32.totalorder %s4085_s1, %s3235_s4 }
 0xd6c   : > { %s4279_s16 = sld [smem:[#allocation55_spill]]  ;;  %s3385_s20 = smov [#allocation14]  }
 0xd6d   : > { %s3239_s22 = sshll.u32 %s3385_s20, 4  ;;  %s3240_s22 = int_to_ptr.vmem [resolvable:$false] %s3239_s22 }
 0xd6e   : > { %s3241_s13 = scalar_lea.vmem %s3240_s22, 512  ;;  %p3242_p3 = scmp.lt.s32.totalorder %s4085_s1, %s3240_s22 }
 0xd6f   : > { %s2656_s14 = sshll.u32 %s4276_s17, 8  ;;  %p3243_p11 = scmp.lt.s32.totalorder %s3241_s13, %s3235_s4 }
 0xd70   : > { %s4280_s10 = sand.u32 1, %s4277_s18  }
 0xd71   : > { %s4089_s19 = scalar_lea.sflag [#allocation5], %s4280_s10  ;;  %p4281_p8 = scmp.ne.s32.totalorder %s4278_s8, 0 }
 0xd72   : > { %s4082_s9 = scalar_lea.hbm %s4279_s16, %s2656_s14  ;;  %p3244_p1 = por %p3243_p11, %p3242_p3 }
 0xd73   : > { %p3237_p9 = pnand %p3236_p10, %p4281_p8 }
 0xd75   : > { %p3238_p4 = pneg %p3237_p9 }
 0xd77   : > { %p3245_p7 = pnand %p3244_p1, %p3238_p4 }
 0xd79   : > { %3248 = shalt.err (!%p3245_p7)
}
 0xd7a   : > { %s3249_s15 = scalar_lea.hbm %s4082_s9, 256  ;;  %s3253_s7 = scalar_lea.hbm %s4279_s16, 512 }
 0xd7b   : > { %p3250_p0 = scmp.ne.s32.totalorder %s4082_s9, %s3249_s15  ;;  %p3254_p2 = scmp.lt.s32.totalorder %s4082_s9, %s4279_s16 }
 0xd7c   : > { %p3255_p5 = scmp.lt.s32.totalorder %s3253_s7, %s3249_s15 }
 0xd7d   : > { %p3251_p6 = pnand %p3250_p0, %p4281_p8 }
 0xd7e   : > { %p3256_p12 = por %p3255_p5, %p3254_p2 }
 0xd7f   : > { %p3252_p13 = pneg %p3251_p6 }
 0xd81   : > { %p3257_p10 = pnand %p3256_p12, %p3252_p13 }
 0xd83   : > { %3260 = shalt.err (!%p3257_p10)
}
 0xd84   : > { %s3386_s3 = smov 128   ;;  %s3387_s2 = smov 8  }
 0xd85   : > { %2851 = dma.vmem_to_hbm [thread:$0]  (%p4281_p8), %s4085_s1, 256, %s4082_s9, %s4089_s19, %s3386_s3, %s3386_s3, %s3387_s2  }
 0xd86 PF: > { %s4282_s29 = sld [smem:[#allocation29_spill]] }
 0xd87   : > { %s4283_s23 = sld [smem:[#allocation20_spill]] }
 0xd88   : > { %s4284_s26 = sld [smem:[#allocation34_spill]] }
 0xd8c   : > { %p2880_p9 = scmp.ge.s32.totalorder %s4282_s29, 2 }
 0xd8d   : > { %s2268_s5 = sand.u32 1, %s4283_s23  }
 0xd8e   : > { %p4285_p4 = scmp.ne.s32.totalorder %s4284_s26, 0  ;;  %s2269_s28 = scalar_lea.sflag [#allocation5], %s2268_s5 }
 0xd90   : > { %p2874_p3 = pnand %p2880_p9, %p4285_p4 }
 0xd92   : > { %p2875_p11 = pneg %p2874_p3 }
 0xd94   : > { %3322 = dma.done.wait (%p2875_p11), %s2269_s28, 256  }
 0xd95   : > { %3324 = vsyncadd (%p2875_p11), %s2269_s28, 4294967040  ;;  %s42_s3 = sadd.s32 1, %s4282_s29   ;;  %s4286_s0 = sld [smem:[#allocation21_spill]] }
 0xd96   : > { %p39_p1 = scmp.ge.s32.totalorder %s42_s3, 6   ;;  %s4287_s30 = sld [smem:[#allocation22_spill]] }
 0xd97   : > { %s4288_s20 = sld [smem:[#allocation35_spill]] }
 0xd98   : > { %s4289_s21 = sld [smem:[#allocation23_spill]] }
 0xd99   : > { %s4290_s1 = sld [smem:[#allocation24_spill]] }
 0xd9a   : > { %s4291_s22 = sld [smem:[#allocation31_spill]]  ;;  %41 = sbr.rel (!%p39_p1) target bundleno = 35 (0x23), region = 239 }
 0xd9b   : > { %s4292_s2 = sld [smem:[#allocation27_spill]] }
 0xd9c   : > { %s4293_s23 = sld [smem:[#allocation28_spill]] }
 0xd9d   : > { %s4294_s24 = sld [smem:[#allocation30_spill]] }
 0xd9e   : > { %s4295_s25 = sld [smem:[#allocation32_spill]] }
 0xd9f   :  { %2274 = vsyncpa [#allocation4], 1 }
 0xda0   :  { %2276 = vsyncpa [#allocation4 + $0x1], 1 }
 0xda1   :  { %2277 = vsyncpa [#allocation7], 1 }
 0xda2   :  { %2279 = vsyncpa [#allocation7 + $0x1], 1 }
 0xda3   :  { %2280 = vsyncpa [#allocation10], 1 }
 0xda4   :  { %2282 = vsyncpa [#allocation10 + $0x1], 1 }
 0xda5   :  { %2283 = vsyncpa [#allocation13], 1 }
 0xda6   :  { %2285 = vsyncpa [#allocation13 + $0x1], 1 }
 0xda7   :  { %2286 = vsyncpa [#allocation5], 1 }
 0xda8   :  { %2288 = vsyncpa [#allocation5 + $0x1], 1 }

</bundles_post_ra>
